<compile_context>
chip_gen: v5e
topology: v5e:2x2
jax: 0.10.0
libtpu: 0.0.40
codegen_flags: <defaults>
</compile_context>

<pallas_src>
import functools

import jax
import jax.numpy as jnp
from jax import lax
from jax.experimental import pallas as pl
from jax.experimental.pallas import tpu as pltpu


# -----------------------------------------------------------------------------
# Pallas kernel: single-K-step (X @ W) with fused BN-shift (+ ReLU) epilogue.
# No accumulator scratch / no K grid axis: the MXU f32 result is shifted,
# clamped and cast in registers and stored exactly once per output tile.
# -----------------------------------------------------------------------------
def _mm_shift_relu_kernel(x_ref, w_ref, b_ref, o_ref, *, relu):
    out = jnp.dot(x_ref[...], w_ref[...], preferred_element_type=jnp.float32)
    out = out + b_ref[...]                 # BN shift (scale already in W)
    if relu:
        out = jnp.maximum(out, 0.0)
    o_ref[...] = out.astype(o_ref.dtype)


def _round_up(x, m):
    return ((x + m - 1) // m) * m


def _pick_tile_m(m):
    """16-row aligned (bf16 sublane packing). Single full block for small M;
    exactly two parallel blocks for large M (feeds both v7x TensorCores while
    keeping grid-step overhead minimal on v5e/v6e)."""
    m16 = _round_up(m, 16)
    if m16 <= 128:
        return m16
    return _round_up(m16 // 2, 16)


def _pick_tile_n(np_):
    # np_ is already a multiple of 128; prefer 256 lanes (v6e/v7x MXU width).
    return 256 if np_ % 256 == 0 else 128


def fused_matmul(x, w_pad, shift_pad, n_out, *, relu=True,
                 out_dtype=jnp.bfloat16):
    """x: (M, K); w_pad: (Kp, Np) bf16 (BN-scale folded, zero-padded at build
    time); shift_pad: (1, Np) f32.  Returns (M, n_out) in out_dtype."""
    m, k = x.shape
    kp, np_ = w_pad.shape
    # Single-K-step kernel: the whole K extent lives in one VMEM block.
    assert kp <= 2048, "K too large for the single-step kernel used here"

    tm = _pick_tile_m(m)
    tn = _pick_tile_n(np_)
    mp = _round_up(m, tm)

    xp = x.astype(jnp.bfloat16)            # no-op when already bf16
    if mp != m or kp != k:
        xp = jnp.pad(xp, ((0, mp - m), (0, kp - k)))

    out = pl.pallas_call(
        functools.partial(_mm_shift_relu_kernel, relu=relu),
        out_shape=jax.ShapeDtypeStruct((mp, np_), out_dtype),
        grid_spec=pltpu.PrefetchScalarGridSpec(
            num_scalar_prefetch=0,
            grid=(mp // tm, np_ // tn),
            in_specs=[
                pl.BlockSpec((tm, kp), lambda i, j: (i, 0)),
                pl.BlockSpec((kp, tn), lambda i, j: (0, j)),
                pl.BlockSpec((1, tn), lambda i, j: (0, j)),
            ],
            out_specs=pl.BlockSpec((tm, tn), lambda i, j: (i, j)),
        ),
        compiler_params=pltpu.CompilerParams(
            dimension_semantics=("parallel", "parallel")),
    )(xp, w_pad, shift_pad)
    if mp != m or np_ != n_out:
        out = out[:m, :n_out]
    return out


# -----------------------------------------------------------------------------
# Parameter construction: fold BN, reshape to matmul form, pad + cast ONCE
# -----------------------------------------------------------------------------
class KeyGen:
    def __init__(self, seed):
        self.key = jax.random.PRNGKey(seed)

    def __call__(self):
        self.key, sub = jax.random.split(self.key)
        return sub


def init_bnconv(kg, cin, cout, ksize):
    """Synthetic Conv(bias=False)+BN(eval)+ReLU params; BN scale folded into W."""
    kh, kw = (ksize, ksize) if isinstance(ksize, int) else ksize
    std = (2.0 / (kh * kw * cin)) ** 0.5
    w = std * jax.random.normal(kg(), (kh, kw, cin, cout), jnp.float32)
    gamma = 1.0 + 0.1 * jax.random.normal(kg(), (cout,), jnp.float32)
    beta = 0.1 * jax.random.normal(kg(), (cout,), jnp.float32)
    mean = 0.1 * jax.random.normal(kg(), (cout,), jnp.float32)
    var = jax.random.uniform(kg(), (cout,), jnp.float32, minval=0.5, maxval=1.5)
    scale = gamma / jnp.sqrt(var + 1e-5)
    shift = beta - mean * scale
    w_folded = (w * scale).reshape(kh * kw * cin, cout)   # fold BN scale (f32)
    return {'kh': kh, 'kw': kw, 'cin': cin, 'cout': cout,
            'w_mat': w_folded, 'shift': shift}


def _pack_matmul_params(w_mat, shift):
    """Pad to (128,128) multiples once at build time, cast W to bf16."""
    k, n = w_mat.shape
    kp, np_ = _round_up(k, 128), _round_up(n, 128)
    w_pad = jnp.pad(w_mat, ((0, kp - k), (0, np_ - n))).astype(jnp.bfloat16)
    shift_pad = jnp.pad(shift.reshape(1, n),
                        ((0, 0), (0, np_ - n))).astype(jnp.float32)
    return {'w': w_pad, 'shift': shift_pad, 'n_out': n}


def pack_conv(p):
    packed = _pack_matmul_params(p['w_mat'], p['shift'])
    packed.update(kh=p['kh'], kw=p['kw'], cin=p['cin'], cout=p['cout'])
    return packed


def pack_fused_1x1(plist):
    """Fuse same-input 1x1 convs: concat weights/shifts along Cout."""
    w = jnp.concatenate([p['w_mat'] for p in plist], axis=1)
    shift = jnp.concatenate([p['shift'] for p in plist], axis=0)
    packed = _pack_matmul_params(w, shift)
    packed.update(kh=1, kw=1, cin=plist[0]['cin'],
                  cout=sum(p['cout'] for p in plist))
    packed['splits'] = [p['cout'] for p in plist]
    return packed


def pack_merged_3x3(pa, pb):
    """Branch2/branch3 tails share geometry (3x3, s2, p0) and read adjacent
    channel slabs of the fused 1x1-head output -> one matmul with a
    block-diagonal weight (K = kh*kw*(cin_a+cin_b), N = cout_a+cout_b)."""
    assert (pa['kh'], pa['kw']) == (pb['kh'], pb['kw'])
    kh, kw = pa['kh'], pa['kw']
    ca, cb, oa, ob = pa['cin'], pb['cin'], pa['cout'], pb['cout']
    wa = pa['w_mat'].reshape(kh * kw, ca, oa)
    wb = pb['w_mat'].reshape(kh * kw, cb, ob)
    w = jnp.zeros((kh * kw, ca + cb, oa + ob), jnp.float32)
    w = w.at[:, :ca, :oa].set(wa)
    w = w.at[:, ca:, oa:].set(wb)
    shift = jnp.concatenate([pa['shift'], pb['shift']], axis=0)
    packed = _pack_matmul_params(w.reshape(kh * kw * (ca + cb), oa + ob), shift)
    packed.update(kh=kh, kw=kw, cin=ca + cb, cout=oa + ob)
    return packed


# -----------------------------------------------------------------------------
# Conv (im2col glue + Pallas matmul) and pooling glue
# -----------------------------------------------------------------------------
def _im2col(x, kh, kw, stride, padding):
    """x: NHWC (bf16). Returns (M, KH*KW*C) cols plus output spatial dims."""
    n, h, w_, c = x.shape
    sh, sw = stride
    ph, pw = padding
    oh = (h + 2 * ph - kh) // sh + 1
    ow = (w_ + 2 * pw - kw) // sw + 1
    if (kh, kw, sh, sw, ph, pw) == (1, 1, 1, 1, 0, 0):
        return x.reshape(n * h * w_, c), oh, ow
    # TODO(synk): the patch gather stays in XLA (slices/concat fuse into one
    # fusion); an in-kernel strided-window gather for the stride-2 taps is not
    # expressible with rectangular BlockSpecs and is left out.
    xp = jnp.pad(x, ((0, 0), (ph, ph), (pw, pw), (0, 0)))
    patches = [xp[:, i:i + sh * oh:sh, j:j + sw * ow:sw, :]
               for i in range(kh) for j in range(kw)]
    cols = jnp.concatenate(patches, axis=-1).reshape(n * oh * ow, kh * kw * c)
    return cols, oh, ow


def conv2d(p, x, stride, padding, relu=True, out_dtype=jnp.bfloat16):
    """x: NHWC bf16, p: packed conv params (W already BN-folded/padded/bf16)."""
    n = x.shape[0]
    cols, oh, ow = _im2col(x, p['kh'], p['kw'], stride, padding)
    out = fused_matmul(cols, p['w'], p['shift'], p['n_out'],
                       relu=relu, out_dtype=out_dtype)
    return out.reshape(n, oh, ow, p['cout'])


def max_pool_nhwc(x, k, s):
    return lax.reduce_window(x, -jnp.inf, lax.max,
                             (1, k, k, 1), (1, s, s, 1),
                             ((0, 0), (0, 0), (0, 0), (0, 0)))


# -----------------------------------------------------------------------------
# Reduction_B_Res block
# -----------------------------------------------------------------------------
def init_reduction_b_res(seed, in_channels, b2_n1, b2_n3, b3_n1, b3_n3,
                         b4_n1, b4_n3_1, b4_n3_2):
    kg = KeyGen(seed)
    b2a = init_bnconv(kg, in_channels, b2_n1, 1)
    b2b = init_bnconv(kg, b2_n1, b2_n3, 3)
    b3a = init_bnconv(kg, in_channels, b3_n1, 1)
    b3b = init_bnconv(kg, b3_n1, b3_n3, 3)
    b4a = init_bnconv(kg, in_channels, b4_n1, 1)
    b4b = init_bnconv(kg, b4_n1, b4_n3_1, 3)
    b4c = init_bnconv(kg, b4_n3_1, b4_n3_2, 3)
    return {
        # the three 1x1 branch heads read the same x -> one fused matmul
        'heads_1x1': pack_fused_1x1([b2a, b3a, b4a]),
        # branch2/branch3 tails -> one block-diagonal fused matmul
        'b23': pack_merged_3x3(b2b, b3b),
        'b4b': pack_conv(b4b),
        'b4c': pack_conv(b4c),
    }


def reduction_b_res_forward(params, x_nchw):
    # PyTorch NCHW input -> NHWC; cast activations to bf16 once for the MXU.
    x32 = jnp.transpose(x_nchw, (0, 2, 3, 1)).astype(jnp.float32)
    x = x32.astype(jnp.bfloat16)
    n, h, w_, c = x.shape

    # branch1: max_pool2d(x, 3, 2, 0) in f32 (kept in XLA; negligible FLOPs)
    out1 = max_pool_nhwc(x32, 3, 2)

    # fused 1x1 heads of branch2/3/4: single pallas_call over [b2a|b3a|b4a].
    heads = params['heads_1x1']
    head_out = fused_matmul(x.reshape(n * h * w_, c), heads['w'],
                            heads['shift'], heads['n_out'],
                            relu=True, out_dtype=jnp.bfloat16)
    head_out = head_out.reshape(n, h, w_, heads['n_out'])
    c2, c3, _ = heads['splits']

    # branch2 & branch3 tails (3x3, stride 2, no pad) fused into one matmul
    # over the [t2|t3] channel slab; output is already [out2|out3] in the
    # final concat order.
    out23 = conv2d(params['b23'], head_out[..., :c2 + c3], (2, 2), (0, 0),
                   out_dtype=jnp.float32)

    # branch4 tail: 3x3 s1 p1 (bf16 intermediate), then 3x3 s2 p0 (f32 out).
    t4 = conv2d(params['b4b'], head_out[..., c2 + c3:], (1, 1), (1, 1),
                out_dtype=jnp.bfloat16)
    out4 = conv2d(params['b4c'], t4, (2, 2), (0, 0), out_dtype=jnp.float32)

    out = jnp.concatenate([out1, out23, out4], axis=-1)    # NHWC concat
    return jnp.transpose(out, (0, 3, 1, 2))                # back to NCHW


if __name__ == "__main__":
    in_channels = 64
    cfg = dict(b2_n1=32, b2_n3=48, b3_n1=32, b3_n3=48,
               b4_n1=32, b4_n3_1=48, b4_n3_2=64)
    params = init_reduction_b_res(seed=0, in_channels=in_channels, **cfg)

    key = jax.random.PRNGKey(0)
    x = jax.random.normal(key, (2, in_channels, 17, 17), jnp.float32)  # NCHW

    fwd = jax.jit(lambda inp: reduction_b_res_forward(params, inp))
    out = fwd(x)
    jax.block_until_ready(out)

    out_c = in_channels + cfg['b2_n3'] + cfg['b3_n3'] + cfg['b4_n3_2']  # 224
    assert out.shape == (2, out_c, 8, 8), out.shape
    assert bool(jnp.all(jnp.isfinite(out)))
    print("KERNEL_OK")
</pallas_src>

<mosaic_0001>
module attributes {stable_mosaic.version = 11 : i64} {
  func.func @_mm_shift_relu_kernel(%arg0: i32, %arg1: i32, %arg2: memref<304x128xbf16, #tpu.memory_space<vmem>>, %arg3: memref<128x128xbf16, #tpu.memory_space<vmem>>, %arg4: memref<1x128xf32, #tpu.memory_space<vmem>>, %arg5: memref<304x128xbf16, #tpu.memory_space<vmem>>) attributes {dimension_semantics = [#tpu.dimension_semantics<parallel>, #tpu.dimension_semantics<parallel>], iteration_bounds = array<i64: 2, 1>, scalar_prefetch = 0 : i64, scratch_operands = 0 : i64, tpu.core_type = #tpu.core_type<tc>, window_params = [{transform_indices = @transform_0, window_bounds = array<i64: 304, 128>}, {transform_indices = @transform_1, window_bounds = array<i64: 128, 128>}, {transform_indices = @transform_2, window_bounds = array<i64: 1, 128>}, {transform_indices = @transform_3, window_bounds = array<i64: 304, 128>}]} {
    %c0 = arith.constant 0 : index
    %c0_0 = arith.constant 0 : index
    %0 = vector.load %arg2[%c0, %c0_0] : memref<304x128xbf16, #tpu.memory_space<vmem>>, vector<304x128xbf16>
    %c0_1 = arith.constant 0 : index
    %c0_2 = arith.constant 0 : index
    %1 = vector.load %arg3[%c0_1, %c0_2] : memref<128x128xbf16, #tpu.memory_space<vmem>>, vector<128x128xbf16>
    %cst = arith.constant dense<0.000000e+00> : vector<304x128xf32>
    %2 = tpu.matmul %0, %1, %cst {dimension_numbers = #tpu.dot_dimension_numbers<[1], [0], [0], [1], [0, 0, 1, 1], [], []>} : vector<304x128xbf16>, vector<128x128xbf16>, vector<304x128xf32> -> vector<304x128xf32>
    %c0_3 = arith.constant 0 : index
    %c0_4 = arith.constant 0 : index
    %3 = vector.load %arg4[%c0_3, %c0_4] : memref<1x128xf32, #tpu.memory_space<vmem>>, vector<1x128xf32>
    %4 = vector.broadcast %3 : vector<1x128xf32> to vector<304x128xf32>
    %5 = arith.addf %2, %4 : vector<304x128xf32>
    %cst_5 = arith.constant 0.000000e+00 : f32
    %6 = vector.broadcast %cst_5 : f32 to vector<304x128xf32>
    %7 = arith.maximumf %5, %6 : vector<304x128xf32>
    %8 = arith.truncf %7 : vector<304x128xf32> to vector<304x128xbf16>
    %c0_6 = arith.constant 0 : index
    %c0_7 = arith.constant 0 : index
    %9 = vector.load %arg5[%c0_6, %c0_7] : memref<304x128xbf16, #tpu.memory_space<vmem>>, vector<304x128xbf16>
    tpu.vector_store %arg5[%c0_6, %c0_7], %8 {strides = array<i32>} : memref<304x128xbf16, #tpu.memory_space<vmem>>, vector<304x128xbf16>,
    return
  }
  func.func @transform_0(%arg0: i32, %arg1: i32) -> (i32, i32) {
    %c0_i32 = arith.constant 0 : i32
    %c0_i32_0 = arith.constant 0 : i32
    return %arg0, %c0_i32 : i32, i32
  }
  func.func @transform_1(%arg0: i32, %arg1: i32) -> (i32, i32) {
    %c0_i32 = arith.constant 0 : i32
    %c0_i32_0 = arith.constant 0 : i32
    return %c0_i32, %arg1 : i32, i32
  }
  func.func @transform_2(%arg0: i32, %arg1: i32) -> (i32, i32) {
    %c0_i32 = arith.constant 0 : i32
    %c0_i32_0 = arith.constant 0 : i32
    return %c0_i32, %arg1 : i32, i32
  }
  func.func @transform_3(%arg0: i32, %arg1: i32) -> (i32, i32) {
    %c0_i32 = arith.constant 0 : i32
    return %arg0, %arg1 : i32, i32
  }
}

module attributes {stable_mosaic.version = 11 : i64} {
  func.func @_mm_shift_relu_kernel(%arg0: i32, %arg1: i32, %arg2: memref<128x640xbf16, #tpu.memory_space<vmem>>, %arg3: memref<640x128xbf16, #tpu.memory_space<vmem>>, %arg4: memref<1x128xf32, #tpu.memory_space<vmem>>, %arg5: memref<128x128xf32, #tpu.memory_space<vmem>>) attributes {dimension_semantics = [#tpu.dimension_semantics<parallel>, #tpu.dimension_semantics<parallel>], iteration_bounds = array<i64: 1, 1>, scalar_prefetch = 0 : i64, scratch_operands = 0 : i64, tpu.core_type = #tpu.core_type<tc>, window_params = [{transform_indices = @transform_0, window_bounds = array<i64: 128, 640>}, {transform_indices = @transform_1, window_bounds = array<i64: 640, 128>}, {transform_indices = @transform_2, window_bounds = array<i64: 1, 128>}, {transform_indices = @transform_3, window_bounds = array<i64: 128, 128>}]} {
    %c0 = arith.constant 0 : index
    %c0_0 = arith.constant 0 : index
    %0 = vector.load %arg2[%c0, %c0_0] : memref<128x640xbf16, #tpu.memory_space<vmem>>, vector<128x640xbf16>
    %c0_1 = arith.constant 0 : index
    %c0_2 = arith.constant 0 : index
    %1 = vector.load %arg3[%c0_1, %c0_2] : memref<640x128xbf16, #tpu.memory_space<vmem>>, vector<640x128xbf16>
    %cst = arith.constant dense<0.000000e+00> : vector<128x128xf32>
    %2 = tpu.matmul %0, %1, %cst {dimension_numbers = #tpu.dot_dimension_numbers<[1], [0], [0], [1], [0, 0, 1, 1], [], []>} : vector<128x640xbf16>, vector<640x128xbf16>, vector<128x128xf32> -> vector<128x128xf32>
    %c0_3 = arith.constant 0 : index
    %c0_4 = arith.constant 0 : index
    %3 = vector.load %arg4[%c0_3, %c0_4] : memref<1x128xf32, #tpu.memory_space<vmem>>, vector<1x128xf32>
    %4 = vector.broadcast %3 : vector<1x128xf32> to vector<128x128xf32>
    %5 = arith.addf %2, %4 : vector<128x128xf32>
    %cst_5 = arith.constant 0.000000e+00 : f32
    %6 = vector.broadcast %cst_5 : f32 to vector<128x128xf32>
    %7 = arith.maximumf %5, %6 : vector<128x128xf32>
    %c0_6 = arith.constant 0 : index
    %c0_7 = arith.constant 0 : index
    %8 = vector.load %arg5[%c0_6, %c0_7] : memref<128x128xf32, #tpu.memory_space<vmem>>, vector<128x128xf32>
    tpu.vector_store %arg5[%c0_6, %c0_7], %7 {strides = array<i32>} : memref<128x128xf32, #tpu.memory_space<vmem>>, vector<128x128xf32>,
    return
  }
  func.func @transform_0(%arg0: i32, %arg1: i32) -> (i32, i32) {
    %c0_i32 = arith.constant 0 : i32
    %c0_i32_0 = arith.constant 0 : i32
    return %arg0, %c0_i32 : i32, i32
  }
  func.func @transform_1(%arg0: i32, %arg1: i32) -> (i32, i32) {
    %c0_i32 = arith.constant 0 : i32
    %c0_i32_0 = arith.constant 0 : i32
    return %c0_i32, %arg1 : i32, i32
  }
  func.func @transform_2(%arg0: i32, %arg1: i32) -> (i32, i32) {
    %c0_i32 = arith.constant 0 : i32
    %c0_i32_0 = arith.constant 0 : i32
    return %c0_i32, %arg1 : i32, i32
  }
  func.func @transform_3(%arg0: i32, %arg1: i32) -> (i32, i32) {
    %c0_i32 = arith.constant 0 : i32
    return %arg0, %arg1 : i32, i32
  }
}

module attributes {stable_mosaic.version = 11 : i64} {
  func.func @_mm_shift_relu_kernel(%arg0: i32, %arg1: i32, %arg2: memref<304x384xbf16, #tpu.memory_space<vmem>>, %arg3: memref<384x128xbf16, #tpu.memory_space<vmem>>, %arg4: memref<1x128xf32, #tpu.memory_space<vmem>>, %arg5: memref<304x128xbf16, #tpu.memory_space<vmem>>) attributes {dimension_semantics = [#tpu.dimension_semantics<parallel>, #tpu.dimension_semantics<parallel>], iteration_bounds = array<i64: 2, 1>, scalar_prefetch = 0 : i64, scratch_operands = 0 : i64, tpu.core_type = #tpu.core_type<tc>, window_params = [{transform_indices = @transform_0, window_bounds = array<i64: 304, 384>}, {transform_indices = @transform_1, window_bounds = array<i64: 384, 128>}, {transform_indices = @transform_2, window_bounds = array<i64: 1, 128>}, {transform_indices = @transform_3, window_bounds = array<i64: 304, 128>}]} {
    %c0 = arith.constant 0 : index
    %c0_0 = arith.constant 0 : index
    %0 = vector.load %arg2[%c0, %c0_0] : memref<304x384xbf16, #tpu.memory_space<vmem>>, vector<304x384xbf16>
    %c0_1 = arith.constant 0 : index
    %c0_2 = arith.constant 0 : index
    %1 = vector.load %arg3[%c0_1, %c0_2] : memref<384x128xbf16, #tpu.memory_space<vmem>>, vector<384x128xbf16>
    %cst = arith.constant dense<0.000000e+00> : vector<304x128xf32>
    %2 = tpu.matmul %0, %1, %cst {dimension_numbers = #tpu.dot_dimension_numbers<[1], [0], [0], [1], [0, 0, 1, 1], [], []>} : vector<304x384xbf16>, vector<384x128xbf16>, vector<304x128xf32> -> vector<304x128xf32>
    %c0_3 = arith.constant 0 : index
    %c0_4 = arith.constant 0 : index
    %3 = vector.load %arg4[%c0_3, %c0_4] : memref<1x128xf32, #tpu.memory_space<vmem>>, vector<1x128xf32>
    %4 = vector.broadcast %3 : vector<1x128xf32> to vector<304x128xf32>
    %5 = arith.addf %2, %4 : vector<304x128xf32>
    %cst_5 = arith.constant 0.000000e+00 : f32
    %6 = vector.broadcast %cst_5 : f32 to vector<304x128xf32>
    %7 = arith.maximumf %5, %6 : vector<304x128xf32>
    %8 = arith.truncf %7 : vector<304x128xf32> to vector<304x128xbf16>
    %c0_6 = arith.constant 0 : index
    %c0_7 = arith.constant 0 : index
    %9 = vector.load %arg5[%c0_6, %c0_7] : memref<304x128xbf16, #tpu.memory_space<vmem>>, vector<304x128xbf16>
    tpu.vector_store %arg5[%c0_6, %c0_7], %8 {strides = array<i32>} : memref<304x128xbf16, #tpu.memory_space<vmem>>, vector<304x128xbf16>,
    return
  }
  func.func @transform_0(%arg0: i32, %arg1: i32) -> (i32, i32) {
    %c0_i32 = arith.constant 0 : i32
    %c0_i32_0 = arith.constant 0 : i32
    return %arg0, %c0_i32 : i32, i32
  }
  func.func @transform_1(%arg0: i32, %arg1: i32) -> (i32, i32) {
    %c0_i32 = arith.constant 0 : i32
    %c0_i32_0 = arith.constant 0 : i32
    return %c0_i32, %arg1 : i32, i32
  }
  func.func @transform_2(%arg0: i32, %arg1: i32) -> (i32, i32) {
    %c0_i32 = arith.constant 0 : i32
    %c0_i32_0 = arith.constant 0 : i32
    return %c0_i32, %arg1 : i32, i32
  }
  func.func @transform_3(%arg0: i32, %arg1: i32) -> (i32, i32) {
    %c0_i32 = arith.constant 0 : i32
    return %arg0, %arg1 : i32, i32
  }
}

module attributes {stable_mosaic.version = 11 : i64} {
  func.func @_mm_shift_relu_kernel(%arg0: i32, %arg1: i32, %arg2: memref<128x512xbf16, #tpu.memory_space<vmem>>, %arg3: memref<512x128xbf16, #tpu.memory_space<vmem>>, %arg4: memref<1x128xf32, #tpu.memory_space<vmem>>, %arg5: memref<128x128xf32, #tpu.memory_space<vmem>>) attributes {dimension_semantics = [#tpu.dimension_semantics<parallel>, #tpu.dimension_semantics<parallel>], iteration_bounds = array<i64: 1, 1>, scalar_prefetch = 0 : i64, scratch_operands = 0 : i64, tpu.core_type = #tpu.core_type<tc>, window_params = [{transform_indices = @transform_0, window_bounds = array<i64: 128, 512>}, {transform_indices = @transform_1, window_bounds = array<i64: 512, 128>}, {transform_indices = @transform_2, window_bounds = array<i64: 1, 128>}, {transform_indices = @transform_3, window_bounds = array<i64: 128, 128>}]} {
    %c0 = arith.constant 0 : index
    %c0_0 = arith.constant 0 : index
    %0 = vector.load %arg2[%c0, %c0_0] : memref<128x512xbf16, #tpu.memory_space<vmem>>, vector<128x512xbf16>
    %c0_1 = arith.constant 0 : index
    %c0_2 = arith.constant 0 : index
    %1 = vector.load %arg3[%c0_1, %c0_2] : memref<512x128xbf16, #tpu.memory_space<vmem>>, vector<512x128xbf16>
    %cst = arith.constant dense<0.000000e+00> : vector<128x128xf32>
    %2 = tpu.matmul %0, %1, %cst {dimension_numbers = #tpu.dot_dimension_numbers<[1], [0], [0], [1], [0, 0, 1, 1], [], []>} : vector<128x512xbf16>, vector<512x128xbf16>, vector<128x128xf32> -> vector<128x128xf32>
    %c0_3 = arith.constant 0 : index
    %c0_4 = arith.constant 0 : index
    %3 = vector.load %arg4[%c0_3, %c0_4] : memref<1x128xf32, #tpu.memory_space<vmem>>, vector<1x128xf32>
    %4 = vector.broadcast %3 : vector<1x128xf32> to vector<128x128xf32>
    %5 = arith.addf %2, %4 : vector<128x128xf32>
    %cst_5 = arith.constant 0.000000e+00 : f32
    %6 = vector.broadcast %cst_5 : f32 to vector<128x128xf32>
    %7 = arith.maximumf %5, %6 : vector<128x128xf32>
    %c0_6 = arith.constant 0 : index
    %c0_7 = arith.constant 0 : index
    %8 = vector.load %arg5[%c0_6, %c0_7] : memref<128x128xf32, #tpu.memory_space<vmem>>, vector<128x128xf32>
    tpu.vector_store %arg5[%c0_6, %c0_7], %7 {strides = array<i32>} : memref<128x128xf32, #tpu.memory_space<vmem>>, vector<128x128xf32>,
    return
  }
  func.func @transform_0(%arg0: i32, %arg1: i32) -> (i32, i32) {
    %c0_i32 = arith.constant 0 : i32
    %c0_i32_0 = arith.constant 0 : i32
    return %arg0, %c0_i32 : i32, i32
  }
  func.func @transform_1(%arg0: i32, %arg1: i32) -> (i32, i32) {
    %c0_i32 = arith.constant 0 : i32
    %c0_i32_0 = arith.constant 0 : i32
    return %c0_i32, %arg1 : i32, i32
  }
  func.func @transform_2(%arg0: i32, %arg1: i32) -> (i32, i32) {
    %c0_i32 = arith.constant 0 : i32
    %c0_i32_0 = arith.constant 0 : i32
    return %c0_i32, %arg1 : i32, i32
  }
  func.func @transform_3(%arg0: i32, %arg1: i32) -> (i32, i32) {
    %c0_i32 = arith.constant 0 : i32
    return %arg0, %arg1 : i32, i32
  }
}

</mosaic_0001>

<bundles_post_ra>
// kernel: _lambda_.4
= control target key start
LH: loop header
LB: loop body
LE: loop exit
PB: predicated region body
PF: predicated region fallthrough
CT: control target
= control target key end

     0   :  { %s1117_s12 = smov 0   ;;  %s1119_s13 = smov 0   ;;  %s1269_s0 = inlined_call_operand.vmem [shape: bf16[608,128], index: 0, kind: input, shape index: {}]   ;;  %s1270_s1 = inlined_call_operand.vmem [shape: bf16[128,128], index: 1, kind: input, shape index: {}]   ;;  %s1271_s2 = inlined_call_operand.vmem [shape: f32[1,128], index: 2, kind: input, shape index: {}]   ;;  %s1272_s3 = inlined_call_operand.vmem [shape: bf16[608,128], index: 3, kind: output, shape index: {}]  }
   0x1   :  { %s1121_s14 = smov 0  }
   0x2 LB: > { %s25_s15 = sadd.s32 1, %s1091_s13  ;;  %p771_p0 = scmp.ge.s32.totalorder %s1095_s14, 1  ;;  %s1095_s14 = sphi %s1121_s14, %s13_s14   ;;  %s1091_s13 = sphi %s1119_s13, %s1274_s13   ;;  %s1087_s12 = sphi %s1117_s12, %s1273_s12  }
   0x3   : > { %p27_p1 = scmp.ge.s32.totalorder %s25_s15, 2  ;;  %p169_p2 = scmp.lt.s32.totalorder %s1095_s14, 3 }
   0x5   : > { %s1276_s15 = smov (%p27_p1, %s25_s15), 0  ;;  %p170_p3 = pnand %p771_p0, %p169_p2 }
   0x6   : > { %s203_s24 = smul.u32 (!%p170_p3), 38, %s1087_s12 }
   0x7   : > { %173 = sbr.rel (%p170_p3) target bundleno = 256 (0x100), region = 32 }
   0x8   : > { %p204_p4 = scmp.lt.s32.totalorder (!%p170_p3), %s203_s24, 75 }
   0xc   : > { %v910_v0 = vld [vmem:[%s1270_s1 + $0x38] sm:$0xff]  ;;  %v909_v1 = vld [vmem:[%s1270_s1 + $0x30] sm:$0xff]  ;;  %v908_v2 = vld [vmem:[%s1270_s1 + $0x28] sm:$0xff]  ;;  %s1278_s24 = smov (!%p204_p4, %s203_s24), 75 }
   0xd   : > { %1024 = vmatpush.bf16.msra.mxu1 %v910_v0  ;;  %1025 = vmatpush.bf16.msra.mxu2 %v910_v0  ;;  %v907_v3 = vld [vmem:[%s1270_s1 + $0x20] sm:$0xff]  ;;  %v906_v4 = vld [vmem:[%s1270_s1 + $0x18] sm:$0xff]  ;;  %v905_v5 = vld [vmem:[%s1270_s1 + $0x10] sm:$0xff]  ;;  %s772_s4 = sshll.u32 %s1278_s24, 2 }
   0xe   : > { %1026 = vmatpush.bf16.msra.mxu3 %v910_v0  ;;  %445 = vmatpush.bf16.msra.mxu0 %v910_v0  ;;  %v904_v6 = vld [vmem:[%s1270_s1 + $0x8] sm:$0xff]  ;;  %v903_v7 = vld [vmem:[%s1270_s1] sm:$0xff]  ;;  %s1170_s9 = scalar_lea.vmem %s1269_s0, %s772_s4  ;;  %s1205_s17 = scalar_lea.vmem %s1272_s3, %s772_s4 }
   0xf   : > { %v888_v8 = vld [vmem:[%s1170_s9 + $0x20] sm:$0xff]  ;;  %v893_v9 = vld [vmem:[%s1170_s9 + $0x48] sm:$0xff]  ;;  %v898_v10 = vld [vmem:[%s1170_s9 + $0x70] sm:$0xff] }
  0x10   : > { %v884_v11 = vld [vmem:[%s1170_s9] sm:$0xff]  ;;  %v889_v12 = vld [vmem:[%s1170_s9 + $0x28] sm:$0xff]  ;;  %v894_v13 = vld [vmem:[%s1170_s9 + $0x50] sm:$0xff] }
  0x11   : > { %1027 = vmatpush.bf16.msra.mxu1 %v909_v1  ;;  %1028 = vmatpush.bf16.msra.mxu2 %v909_v1  ;;  %v899_v14 = vld [vmem:[%s1170_s9 + $0x78] sm:$0xff]  ;;  %v885_v15 = vld [vmem:[%s1170_s9 + $0x8] sm:$0xff]  ;;  %v890_v16 = vld [vmem:[%s1170_s9 + $0x30] sm:$0xff] }
  0x12   : > { %1029 = vmatpush.bf16.msra.mxu3 %v909_v1  ;;  %446 = vmatpush.bf16.msra.mxu0 %v909_v1  ;;  %v895_v17 = vld [vmem:[%s1170_s9 + $0x58] sm:$0xff]  ;;  %v900_v18 = vld [vmem:[%s1170_s9 + $0x80] sm:$0xff]  ;;  %v886_v19 = vld [vmem:[%s1170_s9 + $0x10] sm:$0xff] }
  0x13   : > { %v891_v20 = vld [vmem:[%s1170_s9 + $0x38] sm:$0xff]  ;;  %v896_v21 = vld [vmem:[%s1170_s9 + $0x60] sm:$0xff]  ;;  %v901_v22 = vld [vmem:[%s1170_s9 + $0x88] sm:$0xff] }
  0x14   : > { %v887_v23 = vld [vmem:[%s1170_s9 + $0x18] sm:$0xff]  ;;  %v892_v24 = vld [vmem:[%s1170_s9 + $0x40] sm:$0xff]  ;;  %v897_v25 = vld [vmem:[%s1170_s9 + $0x68] sm:$0xff] }
  0x15   : > { %1030 = vmatpush.bf16.msra.mxu1 %v908_v2  ;;  %1031 = vmatpush.bf16.msra.mxu2 %v908_v2  ;;  %v902_v26 = vld [vmem:[%s1170_s9 + $0x90] sm:$0xff]  ;;  %v1194_v29 = vld [vmem:[%s1271_s2] ss:$0 sm:$0xff] }
  0x16   : > { %1032 = vmatpush.bf16.msra.mxu3 %v908_v2  ;;  %447 = vmatpush.bf16.msra.mxu0 %v908_v2 }
  0x19   : > { %1033 = vmatpush.bf16.msra.mxu1 %v907_v3  ;;  %1034 = vmatpush.bf16.msra.mxu2 %v907_v3 }
  0x1a   : > { %1035 = vmatpush.bf16.msra.mxu3 %v907_v3  ;;  %448 = vmatpush.bf16.msra.mxu0 %v907_v3 }
  0x1d   : > { %1036 = vmatpush.bf16.msra.mxu1 %v906_v4  ;;  %1037 = vmatpush.bf16.msra.mxu2 %v906_v4 }
  0x1e   : > { %1038 = vmatpush.bf16.msra.mxu3 %v906_v4  ;;  %449 = vmatpush.bf16.msra.mxu0 %v906_v4 }
  0x21   : > { %1039 = vmatpush.bf16.msra.mxu1 %v905_v5  ;;  %1040 = vmatpush.bf16.msra.mxu2 %v905_v5 }
  0x22   : > { %1041 = vmatpush.bf16.msra.mxu3 %v905_v5  ;;  %450 = vmatpush.bf16.msra.mxu0 %v905_v5 }
  0x25   : > { %1042 = vmatpush.bf16.msra.mxu1 %v904_v6  ;;  %1043 = vmatpush.bf16.msra.mxu2 %v904_v6 }
  0x26   : > { %1044 = vmatpush.bf16.msra.mxu3 %v904_v6  ;;  %451 = vmatpush.bf16.msra.mxu0 %v904_v6 }
  0x29   : > { %1045 = vmatpush.bf16.msra.mxu1 %v903_v7  ;;  %1046 = vmatpush.bf16.msra.mxu2 %v903_v7 }
  0x2a   : > { %1047 = vmatpush.bf16.msra.mxu3 %v903_v7  ;;  %452 = vmatpush.bf16.msra.mxu0 %v903_v7 }
  0x2c   : > { %473 = vmatmul.bf16.vlgmr.msra.gmra.mxu1 %v888_v8  ;;  %498 = vmatmul.bf16.vlgmr.msra.gmra.mxu2 %v893_v9 }
  0x2d   : > { %523 = vmatmul.bf16.vlgmr.msra.gmra.mxu3 %v898_v10  ;;  %453 = vmatmul.bf16.vlgmr.msra.gmra.mxu0 %v884_v11 }
  0x3c   : > { %478 = vmatmul.bf16.gmra.mxu1 %v889_v12  ;;  %503 = vmatmul.bf16.gmra.mxu2 %v894_v13 }
  0x3d   : > { %528 = vmatmul.bf16.gmra.mxu3 %v899_v14  ;;  %458 = vmatmul.bf16.gmra.mxu0 %v885_v15 }
  0x4c   : > { %483 = vmatmul.bf16.gmra.mxu1 %v890_v16  ;;  %508 = vmatmul.bf16.gmra.mxu2 %v895_v17 }
  0x4d   : > { %533 = vmatmul.bf16.gmra.mxu3 %v900_v18  ;;  %463 = vmatmul.bf16.gmra.mxu0 %v886_v19 }
  0x5c   : > { %488 = vmatmul.bf16.gmra.mxu1 %v891_v20  ;;  %513 = vmatmul.bf16.gmra.mxu2 %v896_v21 }
  0x5d   : > { %538 = vmatmul.bf16.gmra.mxu3 %v901_v22  ;;  %468 = vmatmul.bf16.gmra.mxu0 %v887_v23 }
  0x6c   : > { %493 = vmatmul.bf16.gmra.mxu1 %v892_v24  ;;  %518 = vmatmul.bf16.gmra.mxu2 %v897_v25 }
  0x6d   : > { %543 = vmatmul.bf16.gmra.mxu3 %v902_v26 }
  0xa9   : > { %v474_v27 = vpop.f32.mrf.mxu1 }
  0xaa   : > { %v454_v28 = vpop.f32.mrf.mxu0  ;;  %v475_v32 = vadd.f32 %v1194_v29, %v474_v27 }
  0xab   : > { %v455_v31 = vadd.f32 %v1194_v29, %v454_v28 }
  0xac   : > { %v557_v39 = vmax.f32 %v475_v32, 0.0 }
  0xad   : > { %v549_v37 = vmax.f32 %v455_v31, 0.0 }
  0xaf   : > { %v499_v30 = vpop.f32.mrf.mxu2 }
  0xb0   : > { %v524_v33 = vpop.f32.mrf.mxu3  ;;  %v500_v42 = vadd.f32 %v1194_v29, %v499_v30 }
  0xb1   : > { %v476_v34 = vpop.f32.mrf.mxu1  ;;  %v525_v44 = vadd.f32 %v1194_v29, %v524_v33 }
  0xb2   : > { %v477_v35 = vadd.f32 %v1194_v29, %v476_v34  ;;  %v456_v36 = vpop.f32.mrf.mxu0  ;;  %v567_v51 = vmax.f32 %v500_v42, 0.0 }
  0xb3   : > { %v457_v38 = vadd.f32 %v1194_v29, %v456_v36  ;;  %v577_v54 = vmax.f32 %v525_v44, 0.0 }
  0xb4   : > { %v558_v40 = vmax.f32 %v477_v35, 0.0 }
  0xb5   : > { %v550_v41 = vmax.f32 %v457_v38, 0.0 }
  0xb6   : > { %v934_v43 = vpack.c.bf16 %v558_v40, %v557_v39 }
  0xb7   : > { %v501_v45 = vpop.f32.mrf.mxu2  ;;  %v914_v46 = vpack.c.bf16 %v550_v41, %v549_v37 }
  0xb8   : > { %1009 = vst [vmem:[%s1205_s17 + $0x20] sm:$0xff] %v934_v43   ;;  %v502_v47 = vadd.f32 %v1194_v29, %v501_v45  ;;  %v526_v48 = vpop.f32.mrf.mxu3 }
  0xb9   : > { %v527_v49 = vadd.f32 %v1194_v29, %v526_v48  ;;  %v479_v50 = vpop.f32.mrf.mxu1  ;;  %915 = vst [vmem:[%s1205_s17] sm:$0xff] %v914_v46  }
  0xba   : > { %v568_v52 = vmax.f32 %v502_v47, 0.0  ;;  %v459_v53 = vpop.f32.mrf.mxu0  ;;  %v480_v60 = vadd.f32 %v1194_v29, %v479_v50 }
  0xbb   : > { %v578_v55 = vmax.f32 %v527_v49, 0.0  ;;  %v460_v59 = vadd.f32 %v1194_v29, %v459_v53 }
  0xbc   : > { %v959_v56 = vpack.c.bf16 %v568_v52, %v567_v51  ;;  %v559_v3 = vmax.f32 %v480_v60, 0.0 }
  0xbd   : > { %v984_v57 = vpack.c.bf16 %v578_v55, %v577_v54  ;;  %v551_v1 = vmax.f32 %v460_v59, 0.0 }
  0xbe   : > { %1014 = vst [vmem:[%s1205_s17 + $0x48] sm:$0xff] %v959_v56  }
  0xbf   : > { %1019 = vst [vmem:[%s1205_s17 + $0x70] sm:$0xff] %v984_v57   ;;  %v504_v58 = vpop.f32.mrf.mxu2 }
  0xc0   : > { %v529_v61 = vpop.f32.mrf.mxu3  ;;  %v505_v6 = vadd.f32 %v1194_v29, %v504_v58 }
  0xc1   : > { %v481_v62 = vpop.f32.mrf.mxu1  ;;  %v530_v8 = vadd.f32 %v1194_v29, %v529_v61 }
  0xc2   : > { %v482_v63 = vadd.f32 %v1194_v29, %v481_v62  ;;  %v461_v0 = vpop.f32.mrf.mxu0  ;;  %v569_v15 = vmax.f32 %v505_v6, 0.0 }
  0xc3   : > { %v462_v2 = vadd.f32 %v1194_v29, %v461_v0  ;;  %v579_v18 = vmax.f32 %v530_v8, 0.0 }
  0xc4   : > { %v560_v4 = vmax.f32 %v482_v63, 0.0 }
  0xc5   : > { %v552_v5 = vmax.f32 %v462_v2, 0.0 }
  0xc6   : > { %v939_v7 = vpack.c.bf16 %v560_v4, %v559_v3 }
  0xc7   : > { %v506_v9 = vpop.f32.mrf.mxu2  ;;  %v919_v10 = vpack.c.bf16 %v552_v5, %v551_v1 }
  0xc8   : > { %1010 = vst [vmem:[%s1205_s17 + $0x28] sm:$0xff] %v939_v7   ;;  %v507_v11 = vadd.f32 %v1194_v29, %v506_v9  ;;  %v531_v12 = vpop.f32.mrf.mxu3 }
  0xc9   : > { %v532_v13 = vadd.f32 %v1194_v29, %v531_v12  ;;  %v484_v14 = vpop.f32.mrf.mxu1  ;;  %1006 = vst [vmem:[%s1205_s17 + $0x8] sm:$0xff] %v919_v10  }
  0xca   : > { %v570_v16 = vmax.f32 %v507_v11, 0.0  ;;  %v464_v17 = vpop.f32.mrf.mxu0  ;;  %v485_v24 = vadd.f32 %v1194_v29, %v484_v14 }
  0xcb   : > { %v580_v19 = vmax.f32 %v532_v13, 0.0  ;;  %v465_v23 = vadd.f32 %v1194_v29, %v464_v17 }
  0xcc   : > { %v964_v20 = vpack.c.bf16 %v570_v16, %v569_v15  ;;  %v561_v32 = vmax.f32 %v485_v24, 0.0 }
  0xcd   : > { %v989_v21 = vpack.c.bf16 %v580_v19, %v579_v18  ;;  %v553_v30 = vmax.f32 %v465_v23, 0.0 }
  0xce   : > { %1015 = vst [vmem:[%s1205_s17 + $0x50] sm:$0xff] %v964_v20  }
  0xcf   : > { %1020 = vst [vmem:[%s1205_s17 + $0x78] sm:$0xff] %v989_v21   ;;  %v509_v22 = vpop.f32.mrf.mxu2 }
  0xd0   : > { %v534_v25 = vpop.f32.mrf.mxu3  ;;  %v510_v35 = vadd.f32 %v1194_v29, %v509_v22 }
  0xd1   : > { %v486_v26 = vpop.f32.mrf.mxu1  ;;  %v535_v37 = vadd.f32 %v1194_v29, %v534_v25 }
  0xd2   : > { %v487_v27 = vadd.f32 %v1194_v29, %v486_v26  ;;  %v466_v28 = vpop.f32.mrf.mxu0  ;;  %v571_v44 = vmax.f32 %v510_v35, 0.0 }
  0xd3   : > { %v467_v31 = vadd.f32 %v1194_v29, %v466_v28  ;;  %v581_v47 = vmax.f32 %v535_v37, 0.0 }
  0xd4   : > { %v562_v33 = vmax.f32 %v487_v27, 0.0 }
  0xd5   : > { %v554_v34 = vmax.f32 %v467_v31, 0.0 }
  0xd6   : > { %v944_v36 = vpack.c.bf16 %v562_v33, %v561_v32 }
  0xd7   : > { %v511_v38 = vpop.f32.mrf.mxu2  ;;  %v924_v39 = vpack.c.bf16 %v554_v34, %v553_v30 }
  0xd8   : > { %1011 = vst [vmem:[%s1205_s17 + $0x30] sm:$0xff] %v944_v36   ;;  %v512_v40 = vadd.f32 %v1194_v29, %v511_v38  ;;  %v536_v41 = vpop.f32.mrf.mxu3 }
  0xd9   : > { %v537_v42 = vadd.f32 %v1194_v29, %v536_v41  ;;  %v489_v43 = vpop.f32.mrf.mxu1  ;;  %1007 = vst [vmem:[%s1205_s17 + $0x10] sm:$0xff] %v924_v39  }
  0xda   : > { %v572_v45 = vmax.f32 %v512_v40, 0.0  ;;  %v469_v46 = vpop.f32.mrf.mxu0  ;;  %v490_v53 = vadd.f32 %v1194_v29, %v489_v43 }
  0xdb   : > { %v582_v48 = vmax.f32 %v537_v42, 0.0  ;;  %v470_v52 = vadd.f32 %v1194_v29, %v469_v46 }
  0xdc   : > { %v969_v49 = vpack.c.bf16 %v572_v45, %v571_v44  ;;  %v563_v60 = vmax.f32 %v490_v53, 0.0 }
  0xdd   : > { %v994_v50 = vpack.c.bf16 %v582_v48, %v581_v47  ;;  %v555_v58 = vmax.f32 %v470_v52, 0.0 }
  0xde   : > { %1016 = vst [vmem:[%s1205_s17 + $0x58] sm:$0xff] %v969_v49  }
  0xdf   : > { %1021 = vst [vmem:[%s1205_s17 + $0x80] sm:$0xff] %v994_v50   ;;  %v514_v51 = vpop.f32.mrf.mxu2 }
  0xe0   : > { %v539_v54 = vpop.f32.mrf.mxu3  ;;  %v515_v63 = vadd.f32 %v1194_v29, %v514_v51 }
  0xe1   : > { %v491_v55 = vpop.f32.mrf.mxu1  ;;  %v540_v1 = vadd.f32 %v1194_v29, %v539_v54 }
  0xe2   : > { %v492_v56 = vadd.f32 %v1194_v29, %v491_v55  ;;  %v471_v57 = vpop.f32.mrf.mxu0  ;;  %v573_v8 = vmax.f32 %v515_v63, 0.0 }
  0xe3   : > { %v472_v59 = vadd.f32 %v1194_v29, %v471_v57  ;;  %v583_v10 = vmax.f32 %v540_v1, 0.0 }
  0xe4   : > { %v564_v61 = vmax.f32 %v492_v56, 0.0 }
  0xe5   : > { %v556_v62 = vmax.f32 %v472_v59, 0.0 }
  0xe6   : > { %v949_v0 = vpack.c.bf16 %v564_v61, %v563_v60 }
  0xe7   : > { %v516_v2 = vpop.f32.mrf.mxu2  ;;  %v929_v3 = vpack.c.bf16 %v556_v62, %v555_v58 }
  0xe8   : > { %1012 = vst [vmem:[%s1205_s17 + $0x38] sm:$0xff] %v949_v0   ;;  %v517_v4 = vadd.f32 %v1194_v29, %v516_v2  ;;  %v541_v5 = vpop.f32.mrf.mxu3 }
  0xe9   : > { %v542_v6 = vadd.f32 %v1194_v29, %v541_v5  ;;  %v494_v7 = vpop.f32.mrf.mxu1  ;;  %1008 = vst [vmem:[%s1205_s17 + $0x18] sm:$0xff] %v929_v3  }
  0xea   : > { %v574_v9 = vmax.f32 %v517_v4, 0.0  ;;  %v495_v15 = vadd.f32 %v1194_v29, %v494_v7 }
  0xeb   : > { %v584_v11 = vmax.f32 %v542_v6, 0.0 }
  0xec   : > { %v974_v12 = vpack.c.bf16 %v574_v9, %v573_v8  ;;  %v565_v19 = vmax.f32 %v495_v15, 0.0 }
  0xed   : > { %v999_v13 = vpack.c.bf16 %v584_v11, %v583_v10 }
  0xee   : > { %1017 = vst [vmem:[%s1205_s17 + $0x60] sm:$0xff] %v974_v12  }
  0xef   : > { %1022 = vst [vmem:[%s1205_s17 + $0x88] sm:$0xff] %v999_v13   ;;  %v519_v14 = vpop.f32.mrf.mxu2 }
  0xf0   : > { %v544_v16 = vpop.f32.mrf.mxu3  ;;  %v520_v21 = vadd.f32 %v1194_v29, %v519_v14 }
  0xf1   : > { %v496_v17 = vpop.f32.mrf.mxu1  ;;  %v545_v23 = vadd.f32 %v1194_v29, %v544_v16 }
  0xf2   : > { %v497_v18 = vadd.f32 %v1194_v29, %v496_v17  ;;  %v575_v28 = vmax.f32 %v520_v21, 0.0 }
  0xf3   : > { %v585_v31 = vmax.f32 %v545_v23, 0.0 }
  0xf4   : > { %v566_v20 = vmax.f32 %v497_v18, 0.0 }
  0xf6   : > { %v954_v22 = vpack.c.bf16 %v566_v20, %v565_v19 }
  0xf7   : > { %v521_v24 = vpop.f32.mrf.mxu2 }
  0xf8   : > { %1013 = vst [vmem:[%s1205_s17 + $0x40] sm:$0xff] %v954_v22   ;;  %v522_v25 = vadd.f32 %v1194_v29, %v521_v24  ;;  %v546_v26 = vpop.f32.mrf.mxu3 }
  0xf9   : > { %v547_v27 = vadd.f32 %v1194_v29, %v546_v26 }
  0xfa   : > { %v576_v30 = vmax.f32 %v522_v25, 0.0 }
  0xfb   : > { %v586_v32 = vmax.f32 %v547_v27, 0.0 }
  0xfc   : > { %v979_v33 = vpack.c.bf16 %v576_v30, %v575_v28 }
  0xfd   : > { %v1004_v34 = vpack.c.bf16 %v586_v32, %v585_v31 }
  0xfe   : > { %1018 = vst [vmem:[%s1205_s17 + $0x68] sm:$0xff] %v979_v33  }
  0xff   : > { %1023 = vst [vmem:[%s1205_s17 + $0x90] sm:$0xff] %v1004_v34  }
 0x100 PF: > { %s13_s14 = sadd.s32 1, %s1095_s14   ;;  %s1273_s12 = smov %s1091_s13 }
 0x101   : > { %p10_p5 = scmp.ge.s32.totalorder %s13_s14, 4   ;;  %s1274_s13 = smov %s1276_s15 }
 0x103   :  { %12 = sbr.rel (!%p10_p5) target bundleno = 2 (0x2), region = 68 }

// kernel: _lambda_.5
= control target key start
LH: loop header
LB: loop body
LE: loop exit
PB: predicated region body
PF: predicated region fallthrough
CT: control target
= control target key end

     0   :  { %s1785_s1 = inlined_call_operand.vmem [shape: bf16[640,128], index: 1, kind: input, shape index: {}]   ;;  %s1786_s2 = inlined_call_operand.vmem [shape: f32[1,128], index: 2, kind: input, shape index: {}]   ;;  %s1787_s0 = inlined_call_operand.vmem [shape: bf16[128,640], index: 0, kind: input, shape index: {}]   ;;  %s1788_s3 = inlined_call_operand.vmem [shape: f32[128,128], index: 3, kind: output, shape index: {}]  }
   0x1   :  { %v1242_v0 = vld [vmem:[%s1785_s1 + $0x38] sm:$0xff]  ;;  %v1241_v1 = vld [vmem:[%s1785_s1 + $0x30] sm:$0xff]  ;;  %v1240_v2 = vld [vmem:[%s1785_s1 + $0x28] sm:$0xff] }
   0x2   :  { %1275 = vmatpush.bf16.msra.mxu1 %v1242_v0  ;;  %1276 = vmatpush.bf16.msra.mxu2 %v1242_v0  ;;  %v1239_v3 = vld [vmem:[%s1785_s1 + $0x20] sm:$0xff]  ;;  %v1238_v4 = vld [vmem:[%s1785_s1 + $0x18] sm:$0xff]  ;;  %v1237_v5 = vld [vmem:[%s1785_s1 + $0x10] sm:$0xff] }
   0x3   :  { %1277 = vmatpush.bf16.msra.mxu3 %v1242_v0  ;;  %594 = vmatpush.bf16.msra.mxu0 %v1242_v0  ;;  %v1236_v6 = vld [vmem:[%s1785_s1 + $0x8] sm:$0xff]  ;;  %v1235_v7 = vld [vmem:[%s1785_s1] sm:$0xff]  ;;  %v917_v8 = vld [vmem:[%s1787_s0 + $0x50] sm:$0xf] }
   0x4   :  { %v1207_v9 = vld [vmem:[%s1787_s0 + $0x60] sm:$0xf0]  ;;  %v957_v10 = vld [vmem:[%s1787_s0 + $0xa0] sm:$0xf]  ;;  %v1217_v11 = vld [vmem:[%s1787_s0 + $0xb0] sm:$0xf0] }
   0x5   :  { %v997_v12 = vld [vmem:[%s1787_s0 + $0xf0] sm:$0xf]  ;;  %v1227_v13 = vld [vmem:[%s1787_s0 + $0x100] sm:$0xf0]  ;;  %v877_v14 = vld [vmem:[%s1787_s0] sm:$0xf]  ;;  %v918_v18 = vor.u32 %v1207_v9, %v917_v8  ;;  %v958_v19 = vor.u32 %v1217_v11, %v957_v10 }
   0x6   :  { %1278 = vmatpush.bf16.msra.mxu1 %v1241_v1  ;;  %1279 = vmatpush.bf16.msra.mxu2 %v1241_v1  ;;  %v1197_v15 = vld [vmem:[%s1787_s0 + $0x10] sm:$0xf0]  ;;  %v1258_v16 = vld [vmem:[%s1785_s1 + $0xb8] sm:$0xff]  ;;  %v998_v20 = vor.u32 %v1227_v13, %v997_v12  ;;  %v1256_v28 = vld [vmem:[%s1785_s1 + $0xa8] sm:$0xff] }
   0x7   :  { %1280 = vmatpush.bf16.msra.mxu3 %v1241_v1  ;;  %595 = vmatpush.bf16.msra.mxu0 %v1241_v1  ;;  %v1250_v17 = vld [vmem:[%s1785_s1 + $0x78] sm:$0xff]  ;;  %v878_v21 = vor.u32 %v1197_v15, %v877_v14  ;;  %v1257_v24 = vld [vmem:[%s1785_s1 + $0xb0] sm:$0xff]  ;;  %v1248_v29 = vld [vmem:[%s1785_s1 + $0x68] sm:$0xff] }
   0x8   :  { %v1266_v22 = vld [vmem:[%s1785_s1 + $0xf8] sm:$0xff]  ;;  %v1249_v25 = vld [vmem:[%s1785_s1 + $0x70] sm:$0xff]  ;;  %v1264_v30 = vld [vmem:[%s1785_s1 + $0xe8] sm:$0xff] }
   0x9   :  { %v1274_v23 = vld [vmem:[%s1785_s1 + $0x138] sm:$0xff]  ;;  %v1265_v26 = vld [vmem:[%s1785_s1 + $0xf0] sm:$0xff]  ;;  %v1272_v31 = vld [vmem:[%s1785_s1 + $0x128] sm:$0xff] }
   0xa   :  { %1281 = vmatpush.bf16.msra.mxu1 %v1240_v2  ;;  %1282 = vmatpush.bf16.msra.mxu2 %v1240_v2  ;;  %v1273_v27 = vld [vmem:[%s1785_s1 + $0x130] sm:$0xff]  ;;  %v1255_v32 = vld [vmem:[%s1785_s1 + $0xa0] sm:$0xff]  ;;  %v937_v36 = vld [vmem:[%s1787_s0 + $0x78] sm:$0xf] }
   0xb   :  { %1283 = vmatpush.bf16.msra.mxu3 %v1240_v2  ;;  %596 = vmatpush.bf16.msra.mxu0 %v1240_v2  ;;  %v1247_v33 = vld [vmem:[%s1785_s1 + $0x60] sm:$0xff]  ;;  %v1212_v37 = vld [vmem:[%s1787_s0 + $0x88] sm:$0xf0]  ;;  %v977_v38 = vld [vmem:[%s1787_s0 + $0xc8] sm:$0xf] }
   0xc   :  { %v1263_v34 = vld [vmem:[%s1785_s1 + $0xe0] sm:$0xff]  ;;  %v1222_v39 = vld [vmem:[%s1787_s0 + $0xd8] sm:$0xf0]  ;;  %v1017_v40 = vld [vmem:[%s1787_s0 + $0x118] sm:$0xf]  ;;  %v938_v46 = vor.u32 %v1212_v37, %v937_v36 }
   0xd   :  { %v1271_v35 = vld [vmem:[%s1785_s1 + $0x120] sm:$0xff]  ;;  %v1232_v41 = vld [vmem:[%s1787_s0 + $0x128] sm:$0xf0]  ;;  %v897_v42 = vld [vmem:[%s1787_s0 + $0x28] sm:$0xf]  ;;  %v978_v47 = vor.u32 %v1222_v39, %v977_v38 }
   0xe   :  { %1284 = vmatpush.bf16.msra.mxu1 %v1239_v3  ;;  %1285 = vmatpush.bf16.msra.mxu2 %v1239_v3  ;;  %v1202_v43 = vld [vmem:[%s1787_s0 + $0x38] sm:$0xf0]  ;;  %v1018_v48 = vor.u32 %v1232_v41, %v1017_v40  ;;  %v1253_v52 = vld [vmem:[%s1785_s1 + $0x90] sm:$0xff]  ;;  %v1252_v56 = vld [vmem:[%s1785_s1 + $0x88] sm:$0xff] }
   0xf   :  { %1286 = vmatpush.bf16.msra.mxu3 %v1239_v3  ;;  %597 = vmatpush.bf16.msra.mxu0 %v1239_v3  ;;  %v1254_v44 = vld [vmem:[%s1785_s1 + $0x98] sm:$0xff]  ;;  %v898_v49 = vor.u32 %v1202_v43, %v897_v42  ;;  %v1245_v53 = vld [vmem:[%s1785_s1 + $0x50] sm:$0xff]  ;;  %v1244_v57 = vld [vmem:[%s1785_s1 + $0x48] sm:$0xff] }
  0x10   :  { %v1246_v45 = vld [vmem:[%s1785_s1 + $0x58] sm:$0xff]  ;;  %v1261_v54 = vld [vmem:[%s1785_s1 + $0xd0] sm:$0xff]  ;;  %v1260_v58 = vld [vmem:[%s1785_s1 + $0xc8] sm:$0xff] }
  0x11   :  { %v1262_v50 = vld [vmem:[%s1785_s1 + $0xd8] sm:$0xff]  ;;  %v1269_v55 = vld [vmem:[%s1785_s1 + $0x110] sm:$0xff]  ;;  %v1268_v59 = vld [vmem:[%s1785_s1 + $0x108] sm:$0xff] }
  0x12   :  { %1287 = vmatpush.bf16.msra.mxu1 %v1238_v4  ;;  %1288 = vmatpush.bf16.msra.mxu2 %v1238_v4  ;;  %v1270_v51 = vld [vmem:[%s1785_s1 + $0x118] sm:$0xff]  ;;  %v1251_v60 = vld [vmem:[%s1785_s1 + $0x80] sm:$0xff]  ;;  %v885_v2 = vld [vmem:[%s1787_s0 + $0x8] sm:$0xf] }
  0x13   :  { %1289 = vmatpush.bf16.msra.mxu3 %v1238_v4  ;;  %598 = vmatpush.bf16.msra.mxu0 %v1238_v4  ;;  %v1243_v61 = vld [vmem:[%s1785_s1 + $0x40] sm:$0xff]  ;;  %v879_v1 = vld [vmem:[%s1787_s0 + $0x14] sm:$0xf0]  ;;  %v1198_v3 = vld [vmem:[%s1787_s0 + $0x18] sm:$0xf0] }
  0x14   :  { %v1259_v62 = vld [vmem:[%s1785_s1 + $0xc0] sm:$0xff]  ;;  %v1196_v4 = vld [vmem:[%s1787_s0 + $0xc] sm:$0xf]  ;;  %v886_v9 = vor.u32 %v1198_v3, %v885_v2  ;;  %v905_v14 = vld [vmem:[%s1787_s0 + $0x30] sm:$0xf] }
  0x15   :  { %v1267_v63 = vld [vmem:[%s1785_s1 + $0x100] sm:$0xff]  ;;  %v1200_v12 = vld [vmem:[%s1787_s0 + $0x2c] sm:$0xf]  ;;  %v1210_v36 = vld [vmem:[%s1787_s0 + $0x7c] sm:$0xf] }
  0x16   :  { %1290 = vmatpush.bf16.msra.mxu1 %v1237_v5  ;;  %1291 = vmatpush.bf16.msra.mxu2 %v1237_v5  ;;  %v1195_v0 = vld [vmem:[%s1787_s0 + $0x4] sm:$0xf]  ;;  %v899_v13 = vld [vmem:[%s1787_s0 + $0x3c] sm:$0xf0]  ;;  %v939_v37 = vld [vmem:[%s1787_s0 + $0x8c] sm:$0xf0] }
  0x17   :  { %1292 = vmatpush.bf16.msra.mxu3 %v1237_v5  ;;  %599 = vmatpush.bf16.msra.mxu0 %v1237_v5  ;;  %v887_v5 = vld [vmem:[%s1787_s0 + $0x1c] sm:$0xf0]  ;;  %v882_v8 = vor.u32 %v1195_v0, %v879_v1  ;;  %v1203_v15 = vld [vmem:[%s1787_s0 + $0x40] sm:$0xf0]  ;;  %v1213_v39 = vld [vmem:[%s1787_s0 + $0x90] sm:$0xf0] }
  0x18   :  { %v890_v10 = vor.u32 %v1196_v4, %v887_v5  ;;  %v945_v38 = vld [vmem:[%s1787_s0 + $0x80] sm:$0xf]  ;;  %v1211_v40 = vld [vmem:[%s1787_s0 + $0x84] sm:$0xf]  ;;  %v947_v41 = vld [vmem:[%s1787_s0 + $0x94] sm:$0xf0] }
  0x19   :  { %v953_v42 = vld [vmem:[%s1787_s0 + $0x88] sm:$0xf]  ;;  %v1214_v43 = vld [vmem:[%s1787_s0 + $0x98] sm:$0xf0]  ;;  %v1221_v0 = vld [vmem:[%s1787_s0 + $0xd4] sm:$0xf] }
  0x1a   :  { %1293 = vmatpush.bf16.msra.mxu1 %v1236_v6  ;;  %1294 = vmatpush.bf16.msra.mxu2 %v1236_v6  ;;  %v987_v1 = vld [vmem:[%s1787_s0 + $0xe4] sm:$0xf0]  ;;  %v993_v2 = vld [vmem:[%s1787_s0 + $0xd8] sm:$0xf]  ;;  %v1224_v3 = vld [vmem:[%s1787_s0 + $0xe8] sm:$0xf0] }
  0x1b   :  { %1295 = vmatpush.bf16.msra.mxu3 %v1236_v6  ;;  %600 = vmatpush.bf16.msra.mxu0 %v1236_v6  ;;  %v893_v6 = vld [vmem:[%s1787_s0 + $0x10] sm:$0xf] }
  0x1e   :  { %1296 = vmatpush.bf16.msra.mxu1 %v1235_v7  ;;  %1297 = vmatpush.bf16.msra.mxu2 %v1235_v7 }
  0x1f   :  { %1298 = vmatpush.bf16.msra.mxu3 %v1235_v7  ;;  %601 = vmatpush.bf16.msra.mxu0 %v1235_v7  ;;  %v1199_v7 = vld [vmem:[%s1787_s0 + $0x20] sm:$0xf0] }
  0x20   :  { %v894_v11 = vor.u32 %v1199_v7, %v893_v6  ;;  %v990_v6 = vor.u32 %v1221_v0, %v987_v1  ;;  %v994_v7 = vor.u32 %v1224_v3, %v993_v2 }
  0x21   :  { %612 = vmatmul.bf16.vlgmr.msra.gmra.mxu1 %v918_v18  ;;  %622 = vmatmul.bf16.vlgmr.msra.gmra.mxu2 %v958_v19  ;;  %v913_v18 = vld [vmem:[%s1787_s0 + $0x38] sm:$0xf]  ;;  %v1204_v19 = vld [vmem:[%s1787_s0 + $0x48] sm:$0xf0] }
  0x22   :  { %692 = vmatpush.bf16.msrb.mxu2 %v1258_v16  ;;  %643 = vmatpush.bf16.msrb.mxu1 %v1250_v17  ;;  %v1201_v16 = vld [vmem:[%s1787_s0 + $0x34] sm:$0xf]  ;;  %v907_v17 = vld [vmem:[%s1787_s0 + $0x44] sm:$0xf0] }
  0x23   :  { %632 = vmatmul.bf16.vlgmr.msra.gmra.mxu3 %v998_v20  ;;  %602 = vmatmul.bf16.vlgmr.msra.gmra.mxu0 %v878_v21  ;;  %v902_v20 = vor.u32 %v1200_v12, %v899_v13  ;;  %v906_v21 = vor.u32 %v1203_v15, %v905_v14  ;;  %v1226_v12 = vld [vmem:[%s1787_s0 + $0xfc] sm:$0xf]  ;;  %v1007_v13 = vld [vmem:[%s1787_s0 + $0x10c] sm:$0xf0]  ;;  %v1013_v14 = vld [vmem:[%s1787_s0 + $0x100] sm:$0xf] }
  0x24   :  { %741 = vmatpush.bf16.msrb.mxu3 %v1266_v22  ;;  %790 = vmatpush.bf16.msrb.mxu0 %v1274_v23  ;;  %v910_v22 = vor.u32 %v1201_v16, %v907_v17  ;;  %v914_v23 = vor.u32 %v1204_v19, %v913_v18  ;;  %v1229_v15 = vld [vmem:[%s1787_s0 + $0x110] sm:$0xf0]  ;;  %v1010_v19 = vor.u32 %v1226_v12, %v1007_v13 }
  0x26   :  { %693 = vmatpush.bf16.msrb.mxu2 %v1257_v24  ;;  %644 = vmatpush.bf16.msrb.mxu1 %v1249_v25  ;;  %v1205_v24 = vld [vmem:[%s1787_s0 + $0x54] sm:$0xf]  ;;  %v919_v25 = vld [vmem:[%s1787_s0 + $0x64] sm:$0xf0] }
  0x28   :  { %742 = vmatpush.bf16.msrb.mxu3 %v1265_v26  ;;  %791 = vmatpush.bf16.msrb.mxu0 %v1273_v27  ;;  %v925_v26 = vld [vmem:[%s1787_s0 + $0x58] sm:$0xf]  ;;  %v1208_v27 = vld [vmem:[%s1787_s0 + $0x68] sm:$0xf0] }
  0x2a   :  { %694 = vmatpush.bf16.msrb.mxu2 %v1256_v28  ;;  %645 = vmatpush.bf16.msrb.mxu1 %v1248_v29  ;;  %v1206_v28 = vld [vmem:[%s1787_s0 + $0x5c] sm:$0xf]  ;;  %v927_v29 = vld [vmem:[%s1787_s0 + $0x6c] sm:$0xf0] }
  0x2c   :  { %743 = vmatpush.bf16.msrb.mxu3 %v1264_v30  ;;  %792 = vmatpush.bf16.msrb.mxu0 %v1272_v31  ;;  %v933_v30 = vld [vmem:[%s1787_s0 + $0x60] sm:$0xf]  ;;  %v1209_v31 = vld [vmem:[%s1787_s0 + $0x70] sm:$0xf0] }
  0x2e   :  { %695 = vmatpush.bf16.msrb.mxu2 %v1255_v32  ;;  %646 = vmatpush.bf16.msrb.mxu1 %v1247_v33  ;;  %v922_v32 = vor.u32 %v1205_v24, %v919_v25  ;;  %v926_v33 = vor.u32 %v1208_v27, %v925_v26 }
  0x30   :  { %744 = vmatpush.bf16.msrb.mxu3 %v1263_v34  ;;  %793 = vmatpush.bf16.msrb.mxu0 %v1271_v35  ;;  %v930_v34 = vor.u32 %v1206_v28, %v927_v29  ;;  %v934_v35 = vor.u32 %v1209_v31, %v933_v30  ;;  %v1230_v29 = vld [vmem:[%s1787_s0 + $0x11c] sm:$0xf]  ;;  %v1019_v30 = vld [vmem:[%s1787_s0 + $0x12c] sm:$0xf0]  ;;  %v1025_v31 = vld [vmem:[%s1787_s0 + $0x120] sm:$0xf] }
  0x31   :  { %617 = vmatmul.bf16.gmra.mxu1 %v938_v46  ;;  %627 = vmatmul.bf16.gmra.mxu2 %v978_v47  ;;  %v950_v46 = vor.u32 %v1211_v40, %v947_v41  ;;  %v954_v47 = vor.u32 %v1214_v43, %v953_v42  ;;  %v1022_v40 = vor.u32 %v1230_v29, %v1019_v30 }
  0x32   :  { %696 = vmatpush.bf16.msrb.mxu2 %v1254_v44  ;;  %647 = vmatpush.bf16.msrb.mxu1 %v1246_v45  ;;  %v942_v44 = vor.u32 %v1210_v36, %v939_v37  ;;  %v946_v45 = vor.u32 %v1213_v39, %v945_v38  ;;  %v1234_v36 = vld [vmem:[%s1787_s0 + $0x138] sm:$0xf0] }
  0x33   :  { %637 = vmatmul.bf16.gmra.mxu3 %v1018_v48  ;;  %607 = vmatmul.bf16.gmra.mxu0 %v898_v49  ;;  %v1215_v48 = vld [vmem:[%s1787_s0 + $0xa4] sm:$0xf]  ;;  %v959_v49 = vld [vmem:[%s1787_s0 + $0xb4] sm:$0xf0] }
  0x34   :  { %745 = vmatpush.bf16.msrb.mxu3 %v1262_v50  ;;  %794 = vmatpush.bf16.msrb.mxu0 %v1270_v51  ;;  %v965_v50 = vld [vmem:[%s1787_s0 + $0xa8] sm:$0xf]  ;;  %v1218_v51 = vld [vmem:[%s1787_s0 + $0xb8] sm:$0xf0] }
  0x36   :  { %697 = vmatpush.bf16.msrb.mxu2 %v1253_v52  ;;  %648 = vmatpush.bf16.msrb.mxu1 %v1245_v53  ;;  %v1216_v52 = vld [vmem:[%s1787_s0 + $0xac] sm:$0xf]  ;;  %v967_v53 = vld [vmem:[%s1787_s0 + $0xbc] sm:$0xf0] }
  0x38   :  { %746 = vmatpush.bf16.msrb.mxu3 %v1261_v54  ;;  %795 = vmatpush.bf16.msrb.mxu0 %v1269_v55  ;;  %v973_v54 = vld [vmem:[%s1787_s0 + $0xb0] sm:$0xf]  ;;  %v1219_v55 = vld [vmem:[%s1787_s0 + $0xc0] sm:$0xf0] }
  0x3a   :  { %698 = vmatpush.bf16.msrb.mxu2 %v1252_v56  ;;  %649 = vmatpush.bf16.msrb.mxu1 %v1244_v57  ;;  %v962_v56 = vor.u32 %v1215_v48, %v959_v49  ;;  %v966_v57 = vor.u32 %v1218_v51, %v965_v50 }
  0x3c   :  { %747 = vmatpush.bf16.msrb.mxu3 %v1260_v58  ;;  %796 = vmatpush.bf16.msrb.mxu0 %v1268_v59  ;;  %v970_v58 = vor.u32 %v1216_v52, %v967_v53  ;;  %v974_v59 = vor.u32 %v1219_v55, %v973_v54 }
  0x3e   :  { %699 = vmatpush.bf16.msrb.mxu2 %v1251_v60  ;;  %650 = vmatpush.bf16.msrb.mxu1 %v1243_v61  ;;  %v1220_v60 = vld [vmem:[%s1787_s0 + $0xcc] sm:$0xf]  ;;  %v979_v61 = vld [vmem:[%s1787_s0 + $0xdc] sm:$0xf0] }
  0x3f   :  { %v982_v4 = vor.u32 %v1220_v60, %v979_v61 }
  0x40   :  { %748 = vmatpush.bf16.msrb.mxu3 %v1259_v62  ;;  %797 = vmatpush.bf16.msrb.mxu0 %v1267_v63  ;;  %v985_v62 = vld [vmem:[%s1787_s0 + $0xd0] sm:$0xf]  ;;  %v1223_v63 = vld [vmem:[%s1787_s0 + $0xe0] sm:$0xf0] }
  0x41   :  { %651 = vmatmul.bf16.vlgmr.msrb.gmra.mxu1 %v882_v8  ;;  %700 = vmatmul.bf16.vlgmr.msrb.gmra.mxu2 %v886_v9  ;;  %v986_v5 = vor.u32 %v1223_v63, %v985_v62  ;;  %v1225_v8 = vld [vmem:[%s1787_s0 + $0xf4] sm:$0xf]  ;;  %v999_v9 = vld [vmem:[%s1787_s0 + $0x104] sm:$0xf0] }
  0x42   :  { %v1002_v16 = vor.u32 %v1225_v8, %v999_v9 }
  0x43   :  { %749 = vmatmul.bf16.vlgmr.msrb.gmra.mxu3 %v890_v10  ;;  %798 = vmatmul.bf16.vlgmr.msrb.gmra.mxu0 %v894_v11  ;;  %v1005_v10 = vld [vmem:[%s1787_s0 + $0xf8] sm:$0xf]  ;;  %v1228_v11 = vld [vmem:[%s1787_s0 + $0x108] sm:$0xf0] }
  0x44   :  { %v1006_v17 = vor.u32 %v1228_v11, %v1005_v10 }
  0x51   :  { %656 = vmatmul.bf16.gmra.mxu1 %v902_v20  ;;  %705 = vmatmul.bf16.gmra.mxu2 %v906_v21  ;;  %v1014_v20 = vor.u32 %v1229_v15, %v1013_v14 }
  0x53   :  { %754 = vmatmul.bf16.gmra.mxu3 %v910_v22  ;;  %803 = vmatmul.bf16.gmra.mxu0 %v914_v23  ;;  %v1661_v22 = vld [vmem:[%s1786_s2] ss:$0 sm:$0xff] }
  0x61   :  { %661 = vmatmul.bf16.gmra.mxu1 %v922_v32  ;;  %710 = vmatmul.bf16.gmra.mxu2 %v926_v33  ;;  %v1233_v32 = vld [vmem:[%s1787_s0 + $0x130] sm:$0xf0]  ;;  %v1231_v33 = vld [vmem:[%s1787_s0 + $0x124] sm:$0xf] }
  0x62   :  { %v1026_v41 = vor.u32 %v1233_v32, %v1025_v31 }
  0x63   :  { %759 = vmatmul.bf16.gmra.mxu3 %v930_v34  ;;  %808 = vmatmul.bf16.gmra.mxu0 %v934_v35  ;;  %v1027_v34 = vld [vmem:[%s1787_s0 + $0x134] sm:$0xf0]  ;;  %v1033_v35 = vld [vmem:[%s1787_s0 + $0x128] sm:$0xf] }
  0x71   :  { %666 = vmatmul.bf16.gmra.mxu1 %v942_v44  ;;  %715 = vmatmul.bf16.gmra.mxu2 %v946_v45  ;;  %v1030_v44 = vor.u32 %v1231_v33, %v1027_v34  ;;  %v1034_v45 = vor.u32 %v1234_v36, %v1033_v35 }
  0x73   :  { %764 = vmatmul.bf16.gmra.mxu3 %v950_v46  ;;  %813 = vmatmul.bf16.gmra.mxu0 %v954_v47 }
  0x81   :  { %671 = vmatmul.bf16.gmra.mxu1 %v962_v56  ;;  %720 = vmatmul.bf16.gmra.mxu2 %v966_v57 }
  0x83   :  { %769 = vmatmul.bf16.gmra.mxu3 %v970_v58  ;;  %818 = vmatmul.bf16.gmra.mxu0 %v974_v59 }
  0x91   :  { %676 = vmatmul.bf16.gmra.mxu1 %v982_v4  ;;  %725 = vmatmul.bf16.gmra.mxu2 %v986_v5 }
  0x93   :  { %774 = vmatmul.bf16.gmra.mxu3 %v990_v6  ;;  %823 = vmatmul.bf16.gmra.mxu0 %v994_v7 }
  0x9e   :  { %v1656_v18 = vpop.f32.mrf.mxu1 }
  0xa0   :  { %v603_v21 = vpop.f32.mrf.mxu0 }
  0xa1   :  { %681 = vmatmul.bf16.gmra.mxu1 %v1002_v16  ;;  %730 = vmatmul.bf16.gmra.mxu2 %v1006_v17  ;;  %v604_v59 = vadd.f32 %v1661_v22, %v603_v21 }
  0xa3   :  { %779 = vmatmul.bf16.gmra.mxu3 %v1010_v19  ;;  %828 = vmatmul.bf16.gmra.mxu0 %v1014_v20 }
  0xa4   :  { %v623_v23 = vpop.f32.mrf.mxu2 }
  0xa5   :  { %v1664_v24 = vadd.f32 %v1661_v22, %v623_v23 }
  0xa6   :  { %v633_v25 = vpop.f32.mrf.mxu3  ;;  %v1669_v27 = vpop.f32.mrf.mxu1 }
  0xa7   :  { %v1667_v26 = vadd.f32 %v1661_v22, %v633_v25 }
  0xa8   :  { %v605_v28 = vpop.f32.mrf.mxu0 }
  0xa9   :  { %v606_v3 = vadd.f32 %v1661_v22, %v605_v28 }
  0xac   :  { %v625_v37 = vpop.f32.mrf.mxu2 }
  0xad   :  { %v1696_v38 = vadd.f32 %v1661_v22, %v625_v37 }
  0xae   :  { %v635_v39 = vpop.f32.mrf.mxu3  ;;  %v1701_v43 = vpop.f32.mrf.mxu1 }
  0xaf   :  { %v1699_v42 = vadd.f32 %v1661_v22, %v635_v39  ;;  %v614_v39 = vadd.f32 %v1661_v22, %v1656_v18 }
  0xb0   :  { %v608_v46 = vpop.f32.mrf.mxu0 }
  0xb1   :  { %686 = vmatmul.bf16.gmra.mxu1 %v1022_v40  ;;  %735 = vmatmul.bf16.gmra.mxu2 %v1026_v41  ;;  %v609_v13 = vadd.f32 %v1661_v22, %v608_v46 }
  0xb3   :  { %784 = vmatmul.bf16.gmra.mxu3 %v1030_v44  ;;  %833 = vmatmul.bf16.gmra.mxu0 %v1034_v45 }
  0xb4   :  { %v628_v47 = vpop.f32.mrf.mxu2 }
  0xb5   :  { %v1704_v48 = vadd.f32 %v1661_v22, %v628_v47 }
  0xb6   :  { %v638_v49 = vpop.f32.mrf.mxu3  ;;  %v1709_v51 = vpop.f32.mrf.mxu1 }
  0xb7   :  { %v1707_v50 = vadd.f32 %v1661_v22, %v638_v49 }
  0xb8   :  { %v610_v52 = vpop.f32.mrf.mxu0 }
  0xb9   :  { %v611_v28 = vadd.f32 %v1661_v22, %v610_v52 }
  0xbc   :  { %v630_v53 = vpop.f32.mrf.mxu2 }
  0xbd   :  { %v1712_v54 = vadd.f32 %v1661_v22, %v630_v53 }
  0xbe   :  { %v640_v55 = vpop.f32.mrf.mxu3  ;;  %v652_v57 = vpop.f32.mrf.mxu1 }
  0xbf   :  { %v1715_v56 = vadd.f32 %v1661_v22, %v640_v55  ;;  %v653_v60 = vadd.f32 %v652_v57, %v604_v59  ;;  %v616_v55 = vadd.f32 %v1661_v22, %v1669_v27 }
  0xc0   :  { %v799_v58 = vpop.f32.mrf.mxu0 }
  0xc4   :  { %v701_v61 = vpop.f32.mrf.mxu2 }
  0xc5   :  { %v702_v62 = vadd.f32 %v701_v61, %v653_v60 }
  0xc6   :  { %v750_v63 = vpop.f32.mrf.mxu3  ;;  %v654_v0 = vpop.f32.mrf.mxu1 }
  0xc7   :  { %v751_v1 = vadd.f32 %v750_v63, %v702_v62  ;;  %v655_v6 = vadd.f32 %v654_v0, %v606_v3 }
  0xc8   :  { %v801_v2 = vpop.f32.mrf.mxu0 }
  0xc9   :  { %v800_v4 = vadd.f32 %v799_v58, %v751_v1  ;;  %v619_v1 = vadd.f32 %v1661_v22, %v1701_v43 }
  0xcb   :  { %v839_v5 = vmax.f32 %v800_v4, 0.0 }
  0xcc   :  { %v703_v7 = vpop.f32.mrf.mxu2 }
  0xcd   :  { %855 = vst [vmem:[%s1788_s3] sm:$0xff] %v839_v5  ;;  %v704_v8 = vadd.f32 %v703_v7, %v655_v6 }
  0xce   :  { %v752_v9 = vpop.f32.mrf.mxu3  ;;  %v657_v10 = vpop.f32.mrf.mxu1 }
  0xcf   :  { %v753_v11 = vadd.f32 %v752_v9, %v704_v8  ;;  %v658_v16 = vadd.f32 %v657_v10, %v609_v13  ;;  %v621_v10 = vadd.f32 %v1661_v22, %v1709_v51 }
  0xd0   :  { %v804_v12 = vpop.f32.mrf.mxu0 }
  0xd1   :  { %v802_v14 = vadd.f32 %v801_v2, %v753_v11 }
  0xd3   :  { %v840_v15 = vmax.f32 %v802_v14, 0.0 }
  0xd4   :  { %v706_v17 = vpop.f32.mrf.mxu2 }
  0xd5   :  { %856 = vst [vmem:[%s1788_s3 + $0x8] sm:$0xff] %v840_v15  ;;  %v707_v19 = vadd.f32 %v706_v17, %v658_v16 }
  0xd6   :  { %v755_v20 = vpop.f32.mrf.mxu3  ;;  %v659_v21 = vpop.f32.mrf.mxu1 }
  0xd7   :  { %v756_v23 = vadd.f32 %v755_v20, %v707_v19  ;;  %v660_v31 = vadd.f32 %v659_v21, %v611_v28 }
  0xd8   :  { %v806_v25 = vpop.f32.mrf.mxu0 }
  0xd9   :  { %v805_v29 = vadd.f32 %v804_v12, %v756_v23 }
  0xdb   :  { %v841_v30 = vmax.f32 %v805_v29, 0.0 }
  0xdc   :  { %v708_v32 = vpop.f32.mrf.mxu2 }
  0xdd   :  { %857 = vst [vmem:[%s1788_s3 + $0x10] sm:$0xff] %v841_v30  ;;  %v709_v33 = vadd.f32 %v708_v32, %v660_v31 }
  0xde   :  { %v757_v34 = vpop.f32.mrf.mxu3  ;;  %v662_v35 = vpop.f32.mrf.mxu1 }
  0xdf   :  { %v758_v36 = vadd.f32 %v757_v34, %v709_v33  ;;  %v663_v44 = vadd.f32 %v662_v35, %v614_v39 }
  0xe0   :  { %v809_v37 = vpop.f32.mrf.mxu0 }
  0xe1   :  { %v807_v40 = vadd.f32 %v806_v25, %v758_v36 }
  0xe3   :  { %v842_v41 = vmax.f32 %v807_v40, 0.0 }
  0xe4   :  { %v711_v45 = vpop.f32.mrf.mxu2 }
  0xe5   :  { %858 = vst [vmem:[%s1788_s3 + $0x18] sm:$0xff] %v842_v41  ;;  %v712_v46 = vadd.f32 %v711_v45, %v663_v44 }
  0xe6   :  { %v760_v47 = vpop.f32.mrf.mxu3  ;;  %v664_v49 = vpop.f32.mrf.mxu1 }
  0xe7   :  { %v761_v52 = vadd.f32 %v760_v47, %v712_v46  ;;  %v665_v59 = vadd.f32 %v664_v49, %v616_v55 }
  0xe8   :  { %v811_v53 = vpop.f32.mrf.mxu0 }
  0xe9   :  { %v810_v57 = vadd.f32 %v809_v37, %v761_v52 }
  0xeb   :  { %v843_v58 = vmax.f32 %v810_v57, 0.0 }
  0xec   :  { %v713_v18 = vpop.f32.mrf.mxu2 }
  0xed   :  { %859 = vst [vmem:[%s1788_s3 + $0x20] sm:$0xff] %v843_v58  ;;  %v714_v60 = vadd.f32 %v713_v18, %v665_v59 }
  0xee   :  { %v762_v61 = vpop.f32.mrf.mxu3  ;;  %v667_v62 = vpop.f32.mrf.mxu1 }
  0xef   :  { %v763_v63 = vadd.f32 %v762_v61, %v714_v60  ;;  %v668_v4 = vadd.f32 %v667_v62, %v619_v1 }
  0xf0   :  { %v814_v0 = vpop.f32.mrf.mxu0 }
  0xf1   :  { %v812_v2 = vadd.f32 %v811_v53, %v763_v63 }
  0xf3   :  { %v844_v3 = vmax.f32 %v812_v2, 0.0 }
  0xf4   :  { %v716_v27 = vpop.f32.mrf.mxu2 }
  0xf5   :  { %860 = vst [vmem:[%s1788_s3 + $0x28] sm:$0xff] %v844_v3  ;;  %v717_v5 = vadd.f32 %v716_v27, %v668_v4 }
  0xf6   :  { %v765_v6 = vpop.f32.mrf.mxu3  ;;  %v669_v7 = vpop.f32.mrf.mxu1 }
  0xf7   :  { %v766_v8 = vadd.f32 %v765_v6, %v717_v5  ;;  %v670_v13 = vadd.f32 %v669_v7, %v621_v10 }
  0xf8   :  { %v816_v9 = vpop.f32.mrf.mxu0 }
  0xf9   :  { %v815_v11 = vadd.f32 %v814_v0, %v766_v8 }
  0xfb   :  { %v845_v12 = vmax.f32 %v815_v11, 0.0 }
  0xfc   :  { %v718_v43 = vpop.f32.mrf.mxu2 }
  0xfd   :  { %861 = vst [vmem:[%s1788_s3 + $0x30] sm:$0xff] %v845_v12  ;;  %v719_v14 = vadd.f32 %v718_v43, %v670_v13 }
  0xfe   :  { %v767_v15 = vpop.f32.mrf.mxu3  ;;  %v672_v16 = vpop.f32.mrf.mxu1 }
  0xff   :  { %v768_v17 = vadd.f32 %v767_v15, %v719_v14  ;;  %v673_v23 = vadd.f32 %v672_v16, %v1664_v24 }
 0x100   :  { %v819_v19 = vpop.f32.mrf.mxu0 }
 0x101   :  { %v817_v20 = vadd.f32 %v816_v9, %v768_v17 }
 0x103   :  { %v846_v21 = vmax.f32 %v817_v20, 0.0 }
 0x104   :  { %v721_v25 = vpop.f32.mrf.mxu2 }
 0x105   :  { %862 = vst [vmem:[%s1788_s3 + $0x38] sm:$0xff] %v846_v21  ;;  %v722_v22 = vadd.f32 %v721_v25, %v673_v23 }
 0x106   :  { %v770_v51 = vpop.f32.mrf.mxu3  ;;  %v674_v28 = vpop.f32.mrf.mxu1 }
 0x107   :  { %v771_v29 = vadd.f32 %v770_v51, %v722_v22  ;;  %v675_v33 = vadd.f32 %v674_v28, %v1696_v38 }
 0x108   :  { %v821_v30 = vpop.f32.mrf.mxu0 }
 0x109   :  { %v820_v31 = vadd.f32 %v819_v19, %v771_v29 }
 0x10b   :  { %v847_v32 = vmax.f32 %v820_v31, 0.0 }
 0x10c   :  { %v723_v34 = vpop.f32.mrf.mxu2 }
 0x10d   :  { %863 = vst [vmem:[%s1788_s3 + $0x40] sm:$0xff] %v847_v32  ;;  %v724_v24 = vadd.f32 %v723_v34, %v675_v33 }
 0x10e   :  { %v772_v35 = vpop.f32.mrf.mxu3  ;;  %v677_v36 = vpop.f32.mrf.mxu1 }
 0x10f   :  { %v773_v37 = vadd.f32 %v772_v35, %v724_v24  ;;  %v678_v44 = vadd.f32 %v677_v36, %v1704_v48 }
 0x110   :  { %v824_v39 = vpop.f32.mrf.mxu0 }
 0x111   :  { %v822_v40 = vadd.f32 %v821_v30, %v773_v37 }
 0x113   :  { %v848_v41 = vmax.f32 %v822_v40, 0.0 }
 0x114   :  { %v726_v45 = vpop.f32.mrf.mxu2 }
 0x115   :  { %864 = vst [vmem:[%s1788_s3 + $0x48] sm:$0xff] %v848_v41  ;;  %v727_v38 = vadd.f32 %v726_v45, %v678_v44 }
 0x116   :  { %v775_v46 = vpop.f32.mrf.mxu3  ;;  %v679_v47 = vpop.f32.mrf.mxu1 }
 0x117   :  { %v776_v49 = vadd.f32 %v775_v46, %v727_v38  ;;  %v680_v57 = vadd.f32 %v679_v47, %v1712_v54 }
 0x118   :  { %v826_v52 = vpop.f32.mrf.mxu0 }
 0x119   :  { %v825_v53 = vadd.f32 %v824_v39, %v776_v49 }
 0x11b   :  { %v849_v55 = vmax.f32 %v825_v53, 0.0 }
 0x11c   :  { %v728_v58 = vpop.f32.mrf.mxu2 }
 0x11d   :  { %865 = vst [vmem:[%s1788_s3 + $0x50] sm:$0xff] %v849_v55  ;;  %v729_v48 = vadd.f32 %v728_v58, %v680_v57 }
 0x11e   :  { %v777_v59 = vpop.f32.mrf.mxu3  ;;  %v682_v18 = vpop.f32.mrf.mxu1 }
 0x11f   :  { %v778_v60 = vadd.f32 %v777_v59, %v729_v48  ;;  %v683_v0 = vadd.f32 %v682_v18, %v1667_v26 }
 0x120   :  { %v829_v62 = vpop.f32.mrf.mxu0 }
 0x121   :  { %v827_v61 = vadd.f32 %v826_v52, %v778_v60 }
 0x123   :  { %v850_v63 = vmax.f32 %v827_v61, 0.0 }
 0x124   :  { %v731_v1 = vpop.f32.mrf.mxu2 }
 0x125   :  { %866 = vst [vmem:[%s1788_s3 + $0x58] sm:$0xff] %v850_v63  ;;  %v732_v54 = vadd.f32 %v731_v1, %v683_v0 }
 0x126   :  { %v780_v2 = vpop.f32.mrf.mxu3  ;;  %v684_v3 = vpop.f32.mrf.mxu1 }
 0x127   :  { %v781_v4 = vadd.f32 %v780_v2, %v732_v54  ;;  %v685_v6 = vadd.f32 %v684_v3, %v1699_v42 }
 0x128   :  { %v831_v7 = vpop.f32.mrf.mxu0 }
 0x129   :  { %v830_v27 = vadd.f32 %v829_v62, %v781_v4 }
 0x12b   :  { %v851_v5 = vmax.f32 %v830_v27, 0.0 }
 0x12c   :  { %v733_v8 = vpop.f32.mrf.mxu2 }
 0x12d   :  { %867 = vst [vmem:[%s1788_s3 + $0x60] sm:$0xff] %v851_v5  ;;  %v734_v26 = vadd.f32 %v733_v8, %v685_v6 }
 0x12e   :  { %v782_v9 = vpop.f32.mrf.mxu3  ;;  %v687_v10 = vpop.f32.mrf.mxu1 }
 0x12f   :  { %v783_v11 = vadd.f32 %v782_v9, %v734_v26  ;;  %v688_v43 = vadd.f32 %v687_v10, %v1707_v50 }
 0x130   :  { %v834_v16 = vpop.f32.mrf.mxu0 }
 0x131   :  { %v832_v12 = vadd.f32 %v831_v7, %v783_v11 }
 0x133   :  { %v852_v13 = vmax.f32 %v832_v12, 0.0 }
 0x134   :  { %v736_v14 = vpop.f32.mrf.mxu2 }
 0x135   :  { %868 = vst [vmem:[%s1788_s3 + $0x68] sm:$0xff] %v852_v13  ;;  %v737_v42 = vadd.f32 %v736_v14, %v688_v43 }
 0x136   :  { %v785_v15 = vpop.f32.mrf.mxu3  ;;  %v689_v19 = vpop.f32.mrf.mxu1 }
 0x137   :  { %v786_v17 = vadd.f32 %v785_v15, %v737_v42  ;;  %v690_v23 = vadd.f32 %v689_v19, %v1715_v56 }
 0x138   :  { %v836_v28 = vpop.f32.mrf.mxu0 }
 0x139   :  { %v835_v20 = vadd.f32 %v834_v16, %v786_v17 }
 0x13b   :  { %v853_v21 = vmax.f32 %v835_v20, 0.0 }
 0x13c   :  { %v738_v25 = vpop.f32.mrf.mxu2 }
 0x13d   :  { %869 = vst [vmem:[%s1788_s3 + $0x70] sm:$0xff] %v853_v21  ;;  %v739_v50 = vadd.f32 %v738_v25, %v690_v23 }
 0x13e   :  { %v787_v22 = vpop.f32.mrf.mxu3 }
 0x13f   :  { %v788_v51 = vadd.f32 %v787_v22, %v739_v50 }
 0x141   :  { %v837_v29 = vadd.f32 %v836_v28, %v788_v51 }
 0x143   :  { %v854_v30 = vmax.f32 %v837_v29, 0.0 }
 0x145   :  { %870 = vst [vmem:[%s1788_s3 + $0x78] sm:$0xff] %v854_v30 }

// kernel: _lambda_.6
= control target key start
LH: loop header
LB: loop body
LE: loop exit
PB: predicated region body
PF: predicated region fallthrough
CT: control target
= control target key end

     0   :  { %s1955_s12 = smov 0   ;;  %s1957_s13 = smov 0   ;;  %s2339_s0 = inlined_call_operand.vmem [shape: bf16[608,384], index: 0, kind: input, shape index: {}]   ;;  %s2340_s1 = inlined_call_operand.vmem [shape: bf16[384,128], index: 1, kind: input, shape index: {}]   ;;  %s2341_s2 = inlined_call_operand.vmem [shape: f32[1,128], index: 2, kind: input, shape index: {}]   ;;  %s2342_s3 = inlined_call_operand.vmem [shape: bf16[608,128], index: 3, kind: output, shape index: {}]  }
   0x1   :  { %s1959_s14 = smov 0  }
   0x2 LB: > { %s25_s15 = sadd.s32 1, %s1929_s13  ;;  %p1338_p0 = scmp.ge.s32.totalorder %s1933_s14, 1  ;;  %s1933_s14 = sphi %s1959_s14, %s13_s14   ;;  %s1929_s13 = sphi %s1957_s13, %s2344_s13   ;;  %s1925_s12 = sphi %s1955_s12, %s2343_s12  }
   0x3   : > { %p27_p1 = scmp.ge.s32.totalorder %s25_s15, 2  ;;  %p170_p2 = scmp.lt.s32.totalorder %s1933_s14, 3 }
   0x5   : > { %s2346_s15 = smov (%p27_p1, %s25_s15), 0  ;;  %p171_p3 = pnand %p1338_p0, %p170_p2 }
   0x6   : > { %s205_s30 = smul.u32 (!%p171_p3), 38, %s1925_s12 }
   0x7   : > { %174 = sbr.rel (%p171_p3) target bundleno = 417 (0x1a1), region = 32 }
   0x8   : > { %p206_p4 = scmp.lt.s32.totalorder (!%p171_p3), %s205_s30, 75 }
   0xc   : > { %v1731_v0 = vld [vmem:[%s2340_s1 + $0x38] sm:$0xff]  ;;  %v1730_v3 = vld [vmem:[%s2340_s1 + $0x30] sm:$0xff]  ;;  %v1729_v6 = vld [vmem:[%s2340_s1 + $0x28] sm:$0xff]  ;;  %s2348_s30 = smov (!%p206_p4, %s205_s30), 75 }
   0xd   : > { %v1981_v1 = vld [vmem:[%s2340_s1 + $0x78] sm:$0xff]  ;;  %804 = vmatpush.bf16.msra.mxu0 %v1731_v0  ;;  %1861 = vmatpush.bf16.msra.mxu3 %v1731_v0  ;;  %v1996_v4 = vld [vmem:[%s2340_s1 + $0x70] sm:$0xff]  ;;  %v1737_v7 = vld [vmem:[%s2340_s1 + $0x68] sm:$0xff]  ;;  %s1885_s25 = smul.u32 12, %s2348_s30  ;;  %s1340_s24 = sshll.u32 %s2348_s30, 2 }
   0xe   : > { %v1986_v2 = vld [vmem:[%s2340_s1 + $0xb8] sm:$0xff]  ;;  %908 = vmatpush.bf16.msra.mxu1 %v1981_v1  ;;  %v2001_v5 = vld [vmem:[%s2340_s1 + $0xb0] sm:$0xff]  ;;  %v2015_v8 = vld [vmem:[%s2340_s1 + $0xa8] sm:$0xff]  ;;  %s2195_s27 = scalar_lea.vmem %s2342_s3, %s1340_s24 }
   0xf   : > { %1012 = vmatpush.bf16.msra.mxu2 %v1986_v2  ;;  %v1728_v9 = vld [vmem:[%s2340_s1 + $0x20] sm:$0xff]  ;;  %v1727_v12 = vld [vmem:[%s2340_s1 + $0x18] sm:$0xff]  ;;  %v1726_v15 = vld [vmem:[%s2340_s1 + $0x10] sm:$0xff]  ;;  %s2065_s8 = scalar_lea.vmem %s2339_s0, %s1885_s25 }
  0x10   : > { %v2024_v10 = vld [vmem:[%s2340_s1 + $0x60] sm:$0xff]  ;;  %v1735_v13 = vld [vmem:[%s2340_s1 + $0x58] sm:$0xff]  ;;  %v1734_v16 = vld [vmem:[%s2340_s1 + $0x50] sm:$0xff] }
  0x11   : > { %805 = vmatpush.bf16.msra.mxu0 %v1730_v3  ;;  %1862 = vmatpush.bf16.msra.mxu3 %v1730_v3  ;;  %v2029_v11 = vld [vmem:[%s2340_s1 + $0xa0] sm:$0xff]  ;;  %v2044_v14 = vld [vmem:[%s2340_s1 + $0x98] sm:$0xff]  ;;  %v2057_v17 = vld [vmem:[%s2340_s1 + $0x90] sm:$0xff] }
  0x12   : > { %909 = vmatpush.bf16.msra.mxu1 %v1996_v4  ;;  %v1725_v18 = vld [vmem:[%s2340_s1 + $0x8] sm:$0xff]  ;;  %v1724_v21 = vld [vmem:[%s2340_s1] sm:$0xff]  ;;  %v1713_v27 = vld [vmem:[%s2065_s8 + $0x170] sm:$0xf0] }
  0x13   : > { %1013 = vmatpush.bf16.msra.mxu2 %v2001_v5  ;;  %v1733_v19 = vld [vmem:[%s2340_s1 + $0x48] sm:$0xff]  ;;  %v1732_v22 = vld [vmem:[%s2340_s1 + $0x40] sm:$0xff]  ;;  %v1345_v29 = vld [vmem:[%s2065_s8 + $0xc] sm:$0xf0] }
  0x14   : > { %v2074_v20 = vld [vmem:[%s2340_s1 + $0x88] sm:$0xff]  ;;  %v2085_v23 = vld [vmem:[%s2340_s1 + $0x80] sm:$0xff]  ;;  %v1669_v31 = vld [vmem:[%s2065_s8 + $0x10] sm:$0xf0] }
  0x15   : > { %806 = vmatpush.bf16.msra.mxu0 %v1729_v6  ;;  %1863 = vmatpush.bf16.msra.mxu3 %v1729_v6  ;;  %v1343_v24 = vld [vmem:[%s2065_s8] sm:$0xf]  ;;  %v1668_v25 = vld [vmem:[%s2065_s8 + $0x8] sm:$0xf0]  ;;  %v1523_v26 = vld [vmem:[%s2065_s8 + $0x168] sm:$0xf] }
  0x16   : > { %910 = vmatpush.bf16.msra.mxu1 %v1737_v7  ;;  %v1667_v28 = vld [vmem:[%s2065_s8 + $0x4] sm:$0xf]  ;;  %v1351_v30 = vld [vmem:[%s2065_s8 + $0x8] sm:$0xf]  ;;  %v1344_v32 = vor.u32 %v1668_v25, %v1343_v24  ;;  %v1524_v33 = vor.u32 %v1713_v27, %v1523_v26  ;;  %v1355_v36 = vld [vmem:[%s2065_s8 + $0x18] sm:$0xf] }
  0x17   : > { %1014 = vmatpush.bf16.msra.mxu2 %v2015_v8  ;;  %v1348_v34 = vor.u32 %v1667_v28, %v1345_v29  ;;  %v1352_v35 = vor.u32 %v1669_v31, %v1351_v30  ;;  %v1671_v37 = vld [vmem:[%s2065_s8 + $0x20] sm:$0xf0]  ;;  %v1535_v38 = vld [vmem:[%s2065_s8 + $0x180] sm:$0xf]  ;;  %v1716_v39 = vld [vmem:[%s2065_s8 + $0x188] sm:$0xf0] }
  0x18   : > { %v1670_v40 = vld [vmem:[%s2065_s8 + $0x1c] sm:$0xf]  ;;  %v1357_v41 = vld [vmem:[%s2065_s8 + $0x24] sm:$0xf0]  ;;  %v1363_v42 = vld [vmem:[%s2065_s8 + $0x20] sm:$0xf]  ;;  %v1356_v44 = vor.u32 %v1671_v37, %v1355_v36  ;;  %v1536_v45 = vor.u32 %v1716_v39, %v1535_v38 }
  0x19   : > { %807 = vmatpush.bf16.msra.mxu0 %v1728_v9  ;;  %1864 = vmatpush.bf16.msra.mxu3 %v1728_v9  ;;  %v1672_v43 = vld [vmem:[%s2065_s8 + $0x28] sm:$0xf0]  ;;  %v1360_v46 = vor.u32 %v1670_v40, %v1357_v41  ;;  %v1367_v48 = vld [vmem:[%s2065_s8 + $0x30] sm:$0xf]  ;;  %v1674_v49 = vld [vmem:[%s2065_s8 + $0x38] sm:$0xf0] }
  0x1a   : > { %911 = vmatpush.bf16.msra.mxu1 %v2024_v10  ;;  %v1364_v47 = vor.u32 %v1672_v43, %v1363_v42  ;;  %v1547_v50 = vld [vmem:[%s2065_s8 + $0x198] sm:$0xf]  ;;  %v1719_v51 = vld [vmem:[%s2065_s8 + $0x1a0] sm:$0xf0]  ;;  %v1673_v52 = vld [vmem:[%s2065_s8 + $0x34] sm:$0xf]  ;;  %v1368_v56 = vor.u32 %v1674_v49, %v1367_v48 }
  0x1b   : > { %1015 = vmatpush.bf16.msra.mxu2 %v2029_v11  ;;  %v1369_v53 = vld [vmem:[%s2065_s8 + $0x3c] sm:$0xf0]  ;;  %v1375_v54 = vld [vmem:[%s2065_s8 + $0x38] sm:$0xf]  ;;  %v1675_v55 = vld [vmem:[%s2065_s8 + $0x40] sm:$0xf0]  ;;  %v1548_v57 = vor.u32 %v1719_v51, %v1547_v50 }
  0x1c   : > { %v1372_v58 = vor.u32 %v1673_v52, %v1369_v53  ;;  %v1376_v59 = vor.u32 %v1675_v55, %v1375_v54  ;;  %v1379_v60 = vld [vmem:[%s2065_s8 + $0x48] sm:$0xf]  ;;  %v1677_v61 = vld [vmem:[%s2065_s8 + $0x50] sm:$0xf0]  ;;  %v1559_v62 = vld [vmem:[%s2065_s8 + $0x1b0] sm:$0xf] }
  0x1d   : > { %808 = vmatpush.bf16.msra.mxu0 %v1727_v12  ;;  %1865 = vmatpush.bf16.msra.mxu3 %v1727_v12  ;;  %v1722_v63 = vld [vmem:[%s2065_s8 + $0x1b8] sm:$0xf0]  ;;  %v1676_v0 = vld [vmem:[%s2065_s8 + $0x4c] sm:$0xf]  ;;  %v1525_v12 = vld [vmem:[%s2065_s8 + $0x174] sm:$0xf0] }
  0x1e   : > { %912 = vmatpush.bf16.msra.mxu1 %v1735_v13  ;;  %v1678_v3 = vld [vmem:[%s2065_s8 + $0x58] sm:$0xf0]  ;;  %v1680_v9 = vld [vmem:[%s2065_s8 + $0x68] sm:$0xf0]  ;;  %v1715_v24 = vld [vmem:[%s2065_s8 + $0x184] sm:$0xf] }
  0x1f   : > { %1016 = vmatpush.bf16.msra.mxu2 %v2044_v14  ;;  %v1537_v25 = vld [vmem:[%s2065_s8 + $0x18c] sm:$0xf0]  ;;  %v1411_v26 = vld [vmem:[%s2065_s8 + $0x80] sm:$0xf]  ;;  %v1684_v27 = vld [vmem:[%s2065_s8 + $0x88] sm:$0xf0] }
  0x20   : > { %v1540_v29 = vor.u32 %v1715_v24, %v1537_v25  ;;  %v1412_v31 = vor.u32 %v1684_v27, %v1411_v26  ;;  %v1549_v36 = vld [vmem:[%s2065_s8 + $0x1a4] sm:$0xf0]  ;;  %v1417_v37 = vld [vmem:[%s2065_s8 + $0x9c] sm:$0xf0]  ;;  %v1423_v38 = vld [vmem:[%s2065_s8 + $0x98] sm:$0xf] }
  0x21   : > { %809 = vmatpush.bf16.msra.mxu0 %v1726_v15  ;;  %1866 = vmatpush.bf16.msra.mxu3 %v1726_v15  ;;  %v1681_v15 = vld [vmem:[%s2065_s8 + $0x70] sm:$0xf0]  ;;  %v1687_v39 = vld [vmem:[%s2065_s8 + $0xa0] sm:$0xf0]  ;;  %v1561_v48 = vld [vmem:[%s2065_s8 + $0x1bc] sm:$0xf0] }
  0x22   : > { %913 = vmatpush.bf16.msra.mxu1 %v1734_v16  ;;  %v1424_v43 = vor.u32 %v1687_v39, %v1423_v38  ;;  %v1429_v49 = vld [vmem:[%s2065_s8 + $0xb4] sm:$0xf0]  ;;  %v1435_v50 = vld [vmem:[%s2065_s8 + $0xb0] sm:$0xf]  ;;  %v1690_v51 = vld [vmem:[%s2065_s8 + $0xb8] sm:$0xf0] }
  0x23   : > { %1017 = vmatpush.bf16.msra.mxu2 %v2057_v17  ;;  %v1436_v55 = vor.u32 %v1690_v51, %v1435_v50  ;;  %v1699_v50 = vld [vmem:[%s2065_s8 + $0x100] sm:$0xf0] }
  0x25   : > { %810 = vmatpush.bf16.msra.mxu0 %v1725_v18  ;;  %1867 = vmatpush.bf16.msra.mxu3 %v1725_v18 }
  0x26   : > { %914 = vmatpush.bf16.msra.mxu1 %v1733_v19 }
  0x27   : > { %1018 = vmatpush.bf16.msra.mxu2 %v2074_v20 }
  0x29   : > { %811 = vmatpush.bf16.msra.mxu0 %v1724_v21  ;;  %1868 = vmatpush.bf16.msra.mxu3 %v1724_v21  ;;  %v1683_v21 = vld [vmem:[%s2065_s8 + $0x80] sm:$0xf0] }
  0x2a   : > { %915 = vmatpush.bf16.msra.mxu1 %v1732_v22 }
  0x2b   : > { %1019 = vmatpush.bf16.msra.mxu2 %v2085_v23 }
  0x2c   : > { %812 = vmatmul.bf16.vlgmr.msra.gmra.mxu0 %v1344_v32  ;;  %887 = vmatmul.bf16.vlgmr.msra.gmra.mxu3 %v1524_v33  ;;  %v1415_v32 = vld [vmem:[%s2065_s8 + $0x90] sm:$0xf]  ;;  %v1686_v33 = vld [vmem:[%s2065_s8 + $0x98] sm:$0xf0] }
  0x2d   : > { %1869 = vmatpush.bf16.msrb.mxu3 %v1981_v1  ;;  %916 = vmatmul.bf16.vlgmr.msra.gmra.mxu1 %v1348_v34  ;;  %v1381_v1 = vld [vmem:[%s2065_s8 + $0x54] sm:$0xf0]  ;;  %v1685_v34 = vld [vmem:[%s2065_s8 + $0x94] sm:$0xf]  ;;  %v1416_v40 = vor.u32 %v1686_v33, %v1415_v32 }
  0x2e   : > { %1020 = vmatmul.bf16.vlgmr.msra.gmra.mxu2 %v1352_v35  ;;  %v1384_v6 = vor.u32 %v1676_v0, %v1381_v1  ;;  %v1718_v35 = vld [vmem:[%s2065_s8 + $0x19c] sm:$0xf]  ;;  %v1420_v42 = vor.u32 %v1685_v34, %v1417_v37 }
  0x2f   : > { %v1552_v41 = vor.u32 %v1718_v35, %v1549_v36 }
  0x31   : > { %1870 = vmatpush.bf16.msrb.mxu3 %v1996_v4  ;;  %v1380_v4 = vor.u32 %v1677_v61, %v1379_v60  ;;  %v1714_v60 = vld [vmem:[%s2065_s8 + $0x178] sm:$0xf0]  ;;  %v1441_v61 = vld [vmem:[%s2065_s8 + $0xcc] sm:$0xf0] }
  0x35   : > { %1871 = vmatpush.bf16.msrb.mxu3 %v1737_v7 }
  0x39   : > { %1872 = vmatpush.bf16.msrb.mxu3 %v2024_v10  ;;  %v1679_v10 = vld [vmem:[%s2065_s8 + $0x64] sm:$0xf] }
  0x3c   : > { %817 = vmatmul.bf16.gmra.mxu0 %v1356_v44  ;;  %892 = vmatmul.bf16.gmra.mxu3 %v1536_v45  ;;  %v1427_v44 = vld [vmem:[%s2065_s8 + $0xa8] sm:$0xf]  ;;  %v1689_v45 = vld [vmem:[%s2065_s8 + $0xb0] sm:$0xf0] }
  0x3d   : > { %1873 = vmatpush.bf16.msrb.mxu3 %v1735_v13  ;;  %921 = vmatmul.bf16.gmra.mxu1 %v1360_v46  ;;  %v1393_v13 = vld [vmem:[%s2065_s8 + $0x6c] sm:$0xf0]  ;;  %v1688_v46 = vld [vmem:[%s2065_s8 + $0xac] sm:$0xf]  ;;  %v1428_v52 = vor.u32 %v1689_v45, %v1427_v44  ;;  %v1698_v44 = vld [vmem:[%s2065_s8 + $0xf8] sm:$0xf0] }
  0x3e   : > { %1025 = vmatmul.bf16.gmra.mxu2 %v1364_v47  ;;  %v1396_v18 = vor.u32 %v1679_v10, %v1393_v13  ;;  %v1721_v47 = vld [vmem:[%s2065_s8 + $0x1b4] sm:$0xf]  ;;  %v1432_v54 = vor.u32 %v1688_v46, %v1429_v49  ;;  %v1555_v46 = vld [vmem:[%s2065_s8 + $0x1a0] sm:$0xf]  ;;  %v1471_v49 = vld [vmem:[%s2065_s8 + $0xf8] sm:$0xf] }
  0x3f   : > { %v1564_v53 = vor.u32 %v1721_v47, %v1561_v48  ;;  %v1697_v45 = vld [vmem:[%s2065_s8 + $0xf4] sm:$0xf]  ;;  %v1720_v47 = vld [vmem:[%s2065_s8 + $0x1a8] sm:$0xf0]  ;;  %v1465_v48 = vld [vmem:[%s2065_s8 + $0xfc] sm:$0xf0] }
  0x41   : > { %1874 = vmatpush.bf16.msrb.mxu3 %v1734_v16 }
  0x45   : > { %1875 = vmatpush.bf16.msrb.mxu3 %v1733_v19 }
  0x49   : > { %1876 = vmatpush.bf16.msrb.mxu3 %v1732_v22  ;;  %v1682_v22 = vld [vmem:[%s2065_s8 + $0x7c] sm:$0xf] }
  0x4c   : > { %822 = vmatmul.bf16.gmra.mxu0 %v1368_v56  ;;  %897 = vmatmul.bf16.gmra.mxu3 %v1548_v57  ;;  %v1439_v56 = vld [vmem:[%s2065_s8 + $0xc0] sm:$0xf]  ;;  %v1692_v57 = vld [vmem:[%s2065_s8 + $0xc8] sm:$0xf0] }
  0x4d   : > { %1877 = vmatpush.bf16.msra.mxu3 %v1986_v2  ;;  %926 = vmatmul.bf16.gmra.mxu1 %v1372_v58  ;;  %v1387_v2 = vld [vmem:[%s2065_s8 + $0x50] sm:$0xf]  ;;  %v1691_v58 = vld [vmem:[%s2065_s8 + $0xc4] sm:$0xf]  ;;  %v1440_v0 = vor.u32 %v1692_v57, %v1439_v56  ;;  %v1556_v56 = vor.u32 %v1720_v47, %v1555_v46  ;;  %v1705_v46 = vld [vmem:[%s2065_s8 + $0x130] sm:$0xf0] }
  0x4e   : > { %1030 = vmatmul.bf16.gmra.mxu2 %v1376_v59  ;;  %v1388_v7 = vor.u32 %v1678_v3, %v1387_v2  ;;  %v1531_v59 = vld [vmem:[%s2065_s8 + $0x170] sm:$0xf]  ;;  %v1444_v3 = vor.u32 %v1691_v58, %v1441_v61 }
  0x4f   : > { %v1532_v1 = vor.u32 %v1714_v60, %v1531_v59  ;;  %v1468_v59 = vor.u32 %v1697_v45, %v1465_v48  ;;  %v1472_v60 = vor.u32 %v1699_v50, %v1471_v49  ;;  %v1495_v45 = vld [vmem:[%s2065_s8 + $0x128] sm:$0xf] }
  0x51   : > { %1878 = vmatpush.bf16.msra.mxu3 %v2001_v5  ;;  %v1560_v5 = vor.u32 %v1722_v63, %v1559_v62  ;;  %v1447_v62 = vld [vmem:[%s2065_s8 + $0xc8] sm:$0xf]  ;;  %v1693_v63 = vld [vmem:[%s2065_s8 + $0xd0] sm:$0xf0] }
  0x55   : > { %1879 = vmatpush.bf16.msra.mxu3 %v2015_v8  ;;  %v1391_v8 = vld [vmem:[%s2065_s8 + $0x60] sm:$0xf] }
  0x56   : > { %v1392_v16 = vor.u32 %v1680_v9, %v1391_v8 }
  0x59   : > { %1880 = vmatpush.bf16.msra.mxu3 %v2029_v11  ;;  %v1712_v11 = vld [vmem:[%s2065_s8 + $0x16c] sm:$0xf] }
  0x5c   : > { %827 = vmatmul.bf16.gmra.mxu0 %v1380_v4  ;;  %902 = vmatmul.bf16.gmra.mxu3 %v1560_v5  ;;  %v1448_v4 = vor.u32 %v1693_v63, %v1447_v62 }
  0x5d   : > { %1881 = vmatpush.bf16.msra.mxu3 %v2044_v14  ;;  %931 = vmatmul.bf16.gmra.mxu1 %v1384_v6  ;;  %v1399_v14 = vld [vmem:[%s2065_s8 + $0x68] sm:$0xf]  ;;  %v2175_v6 = vld [vmem:[%s2341_s2] ss:$0 sm:$0xff] }
  0x5e   : > { %1035 = vmatmul.bf16.gmra.mxu2 %v1388_v7  ;;  %v1400_v19 = vor.u32 %v1681_v15, %v1399_v14  ;;  %v1451_v14 = vld [vmem:[%s2065_s8 + $0xd8] sm:$0xf]  ;;  %v1695_v15 = vld [vmem:[%s2065_s8 + $0xe0] sm:$0xf0] }
  0x5f   : > { %v1452_v26 = vor.u32 %v1695_v15, %v1451_v14  ;;  %v1723_v14 = vld [vmem:[%s2065_s8 + $0x1c0] sm:$0xf0]  ;;  %v1477_v15 = vld [vmem:[%s2065_s8 + $0x114] sm:$0xf0] }
  0x61   : > { %1882 = vmatpush.bf16.msra.mxu3 %v2057_v17  ;;  %v1528_v17 = vor.u32 %v1712_v11, %v1525_v12 }
  0x65   : > { %1883 = vmatpush.bf16.msra.mxu3 %v2074_v20  ;;  %v1403_v20 = vld [vmem:[%s2065_s8 + $0x78] sm:$0xf] }
  0x66   : > { %v1404_v28 = vor.u32 %v1683_v21, %v1403_v20  ;;  %v1459_v20 = vld [vmem:[%s2065_s8 + $0xe0] sm:$0xf]  ;;  %v1696_v21 = vld [vmem:[%s2065_s8 + $0xe8] sm:$0xf0] }
  0x69   : > { %1884 = vmatpush.bf16.msra.mxu3 %v2085_v23  ;;  %v1405_v23 = vld [vmem:[%s2065_s8 + $0x84] sm:$0xf0] }
  0x6a   : > { %v1408_v30 = vor.u32 %v1682_v22, %v1405_v23 }
  0x6c   : > { %832 = vmatmul.bf16.gmra.mxu0 %v1392_v16  ;;  %991 = vmatmul.bf16.vlgmr.msrb.gmra.mxu3 %v1528_v17  ;;  %v1694_v16 = vld [vmem:[%s2065_s8 + $0xdc] sm:$0xf]  ;;  %v1543_v17 = vld [vmem:[%s2065_s8 + $0x188] sm:$0xf] }
  0x6d   : > { %936 = vmatmul.bf16.gmra.mxu1 %v1396_v18  ;;  %v1717_v18 = vld [vmem:[%s2065_s8 + $0x190] sm:$0xf0] }
  0x6e   : > { %1040 = vmatmul.bf16.gmra.mxu2 %v1400_v19  ;;  %v1453_v19 = vld [vmem:[%s2065_s8 + $0xe4] sm:$0xf0]  ;;  %v1544_v27 = vor.u32 %v1717_v18, %v1543_v17  ;;  %v1702_v17 = vld [vmem:[%s2065_s8 + $0x118] sm:$0xf0] }
  0x7c   : > { %837 = vmatmul.bf16.gmra.mxu0 %v1404_v28  ;;  %996 = vmatmul.bf16.gmra.mxu3 %v1540_v29 }
  0x7d   : > { %941 = vmatmul.bf16.gmra.mxu1 %v1408_v30  ;;  %v1456_v30 = vor.u32 %v1694_v16, %v1453_v19  ;;  %v1483_v16 = vld [vmem:[%s2065_s8 + $0x110] sm:$0xf] }
  0x7e   : > { %1045 = vmatmul.bf16.gmra.mxu2 %v1412_v31  ;;  %v1460_v31 = vor.u32 %v1696_v21, %v1459_v20 }
  0x8c   : > { %842 = vmatmul.bf16.gmra.mxu0 %v1416_v40  ;;  %1001 = vmatmul.bf16.gmra.mxu3 %v1552_v41 }
  0x8d   : > { %946 = vmatmul.bf16.gmra.mxu1 %v1420_v42 }
  0x8e   : > { %1050 = vmatmul.bf16.gmra.mxu2 %v1424_v43  ;;  %v1463_v43 = vld [vmem:[%s2065_s8 + $0xf0] sm:$0xf] }
  0x9c   : > { %847 = vmatmul.bf16.gmra.mxu0 %v1428_v52  ;;  %1006 = vmatmul.bf16.gmra.mxu3 %v1564_v53 }
  0x9d   : > { %951 = vmatmul.bf16.gmra.mxu1 %v1432_v54 }
  0x9e   : > { %1055 = vmatmul.bf16.gmra.mxu2 %v1436_v55  ;;  %v1464_v55 = vor.u32 %v1698_v44, %v1463_v43  ;;  %v1703_v43 = vld [vmem:[%s2065_s8 + $0x124] sm:$0xf]  ;;  %v1489_v44 = vld [vmem:[%s2065_s8 + $0x12c] sm:$0xf0] }
  0xa9   : > { %v813_v2 = vpop.f32.mrf.mxu0 }
  0xaa   : > { %v917_v5 = vpop.f32.mrf.mxu1  ;;  %v814_v7 = vadd.f32 %v2175_v6, %v813_v2 }
  0xac   : > { %852 = vmatmul.bf16.gmra.mxu0 %v1440_v0  ;;  %1095 = vmatmul.bf16.vlgmr.msra.gmra.mxu3 %v1532_v1  ;;  %v918_v12 = vadd.f32 %v917_v5, %v814_v7 }
  0xad   : > { %956 = vmatmul.bf16.gmra.mxu1 %v1444_v3 }
  0xae   : > { %1060 = vmatmul.bf16.gmra.mxu2 %v1448_v4 }
  0xaf   : > { %v2178_v8 = vpop.f32.mrf.mxu3 }
  0xb1   : > { %v1021_v9 = vpop.f32.mrf.mxu2  ;;  %v815_v10 = vpop.f32.mrf.mxu0 }
  0xb2   : > { %v919_v11 = vpop.f32.mrf.mxu1  ;;  %v816_v13 = vadd.f32 %v2175_v6, %v815_v10  ;;  %v1022_v22 = vadd.f32 %v1021_v9, %v918_v12  ;;  %v1475_v10 = vld [vmem:[%s2065_s8 + $0x108] sm:$0xf]  ;;  %v1700_v12 = vld [vmem:[%s2065_s8 + $0x10c] sm:$0xf] }
  0xb4   : > { %v920_v24 = vadd.f32 %v919_v11, %v816_v13  ;;  %v1116_v33 = vmax.f32 %v1022_v22, 0.0  ;;  %v1701_v11 = vld [vmem:[%s2065_s8 + $0x110] sm:$0xf0]  ;;  %v1567_v13 = vld [vmem:[%s2065_s8 + $0x1b8] sm:$0xf] }
  0xb5   : > { %v1476_v22 = vor.u32 %v1701_v11, %v1475_v10  ;;  %v1707_v10 = vld [vmem:[%s2065_s8 + $0x140] sm:$0xf0]  ;;  %v1706_v11 = vld [vmem:[%s2065_s8 + $0x13c] sm:$0xf] }
  0xb7   : > { %v2189_v25 = vpop.f32.mrf.mxu3 }
  0xb9   : > { %v1023_v23 = vpop.f32.mrf.mxu2  ;;  %v818_v29 = vpop.f32.mrf.mxu0 }
  0xba   : > { %v1024_v28 = vadd.f32 %v1023_v23, %v920_v24  ;;  %v922_v32 = vpop.f32.mrf.mxu1  ;;  %v819_v36 = vadd.f32 %v2175_v6, %v818_v29  ;;  %v1568_v24 = vor.u32 %v1723_v14, %v1567_v13  ;;  %v1507_v13 = vld [vmem:[%s2065_s8 + $0x140] sm:$0xf]  ;;  %v1708_v14 = vld [vmem:[%s2065_s8 + $0x148] sm:$0xf0] }
  0xbc   : > { %v1117_v34 = vmax.f32 %v1024_v28, 0.0  ;;  %857 = vmatmul.bf16.gmra.mxu0 %v1452_v26  ;;  %1100 = vmatmul.bf16.gmra.mxu3 %v1544_v27  ;;  %v923_v41 = vadd.f32 %v922_v32, %v819_v36  ;;  %v1480_v27 = vor.u32 %v1700_v12, %v1477_v15  ;;  %v1484_v28 = vor.u32 %v1702_v17, %v1483_v16  ;;  %v1501_v12 = vld [vmem:[%s2065_s8 + $0x144] sm:$0xf0] }
  0xbd   : > { %961 = vmatmul.bf16.gmra.mxu1 %v1456_v30 }
  0xbe   : > { %v1751_v35 = vpack.c.bf16 %v1117_v34, %v1116_v33  ;;  %1065 = vmatmul.bf16.gmra.mxu2 %v1460_v31 }
  0xbf   : > { %v2199_v37 = vpop.f32.mrf.mxu3 }
  0xc0   : > { %1752 = vst [vmem:[%s2195_s27] sm:$0xff] %v1751_v35  }
  0xc1   : > { %v1026_v38 = vpop.f32.mrf.mxu2  ;;  %v820_v39 = vpop.f32.mrf.mxu0 }
  0xc2   : > { %v924_v40 = vpop.f32.mrf.mxu1  ;;  %v821_v42 = vadd.f32 %v2175_v6, %v820_v39  ;;  %v1027_v51 = vadd.f32 %v1026_v38, %v923_v41  ;;  %v1487_v41 = vld [vmem:[%s2065_s8 + $0x120] sm:$0xf] }
  0xc4   : > { %v925_v52 = vadd.f32 %v924_v40, %v821_v42  ;;  %v1118_v62 = vmax.f32 %v1027_v51, 0.0  ;;  %v1704_v42 = vld [vmem:[%s2065_s8 + $0x128] sm:$0xf0] }
  0xc5   : > { %v1488_v51 = vor.u32 %v1704_v42, %v1487_v41  ;;  %v1710_v41 = vld [vmem:[%s2065_s8 + $0x158] sm:$0xf0]  ;;  %v1709_v42 = vld [vmem:[%s2065_s8 + $0x154] sm:$0xf] }
  0xc7   : > { %v2210_v53 = vpop.f32.mrf.mxu3 }
  0xc9   : > { %v1028_v54 = vpop.f32.mrf.mxu2  ;;  %v823_v58 = vpop.f32.mrf.mxu0 }
  0xca   : > { %v1029_v57 = vadd.f32 %v1028_v54, %v925_v52  ;;  %v927_v61 = vpop.f32.mrf.mxu1  ;;  %v824_v1 = vadd.f32 %v2175_v6, %v823_v58 }
  0xcc   : > { %v1119_v63 = vmax.f32 %v1029_v57, 0.0  ;;  %862 = vmatmul.bf16.gmra.mxu0 %v1464_v55  ;;  %1105 = vmatmul.bf16.gmra.mxu3 %v1556_v56  ;;  %v928_v7 = vadd.f32 %v927_v61, %v824_v1  ;;  %v1492_v55 = vor.u32 %v1703_v43, %v1489_v44  ;;  %v1496_v56 = vor.u32 %v1705_v46, %v1495_v45  ;;  %v1513_v43 = vld [vmem:[%s2065_s8 + $0x15c] sm:$0xf0]  ;;  %v1519_v44 = vld [vmem:[%s2065_s8 + $0x158] sm:$0xf] }
  0xcd   : > { %966 = vmatmul.bf16.gmra.mxu1 %v1468_v59  ;;  %v889_v61 = vadd.f32 %v2175_v6, %v2178_v8  ;;  %v1711_v45 = vld [vmem:[%s2065_s8 + $0x160] sm:$0xf0] }
  0xce   : > { %v1756_v0 = vpack.c.bf16 %v1119_v63, %v1118_v62  ;;  %1070 = vmatmul.bf16.gmra.mxu2 %v1472_v60 }
  0xcf   : > { %v2214_v2 = vpop.f32.mrf.mxu3 }
  0xd0   : > { %1843 = vst [vmem:[%s2195_s27 + $0x8] sm:$0xff] %v1756_v0  }
  0xd1   : > { %v1031_v3 = vpop.f32.mrf.mxu2  ;;  %v825_v4 = vpop.f32.mrf.mxu0 }
  0xd2   : > { %v929_v5 = vpop.f32.mrf.mxu1  ;;  %v826_v9 = vadd.f32 %v2175_v6, %v825_v4  ;;  %v1032_v18 = vadd.f32 %v1031_v3, %v928_v7 }
  0xd4   : > { %v930_v19 = vadd.f32 %v929_v5, %v826_v9  ;;  %v1120_v30 = vmax.f32 %v1032_v18, 0.0  ;;  %v1499_v9 = vld [vmem:[%s2065_s8 + $0x138] sm:$0xf] }
  0xd5   : > { %v1500_v18 = vor.u32 %v1707_v10, %v1499_v9 }
  0xd7   : > { %v2225_v20 = vpop.f32.mrf.mxu3 }
  0xd9   : > { %v1033_v21 = vpop.f32.mrf.mxu2  ;;  %v828_v26 = vpop.f32.mrf.mxu0 }
  0xda   : > { %v1034_v23 = vadd.f32 %v1033_v21, %v930_v19  ;;  %v932_v29 = vpop.f32.mrf.mxu1  ;;  %v829_v33 = vadd.f32 %v2175_v6, %v828_v26 }
  0xdc   : > { %v1121_v31 = vmax.f32 %v1034_v23, 0.0  ;;  %867 = vmatmul.bf16.gmra.mxu0 %v1476_v22  ;;  %1110 = vmatmul.bf16.gmra.mxu3 %v1568_v24  ;;  %v933_v39 = vadd.f32 %v932_v29, %v829_v33  ;;  %v1504_v22 = vor.u32 %v1706_v11, %v1501_v12  ;;  %v1508_v24 = vor.u32 %v1708_v14, %v1507_v13 }
  0xdd   : > { %971 = vmatmul.bf16.gmra.mxu1 %v1480_v27  ;;  %v894_v29 = vadd.f32 %v2175_v6, %v2199_v37 }
  0xde   : > { %v1761_v32 = vpack.c.bf16 %v1121_v31, %v1120_v30  ;;  %1075 = vmatmul.bf16.gmra.mxu2 %v1484_v28 }
  0xdf   : > { %v2229_v34 = vpop.f32.mrf.mxu3 }
  0xe0   : > { %1844 = vst [vmem:[%s2195_s27 + $0x10] sm:$0xff] %v1761_v32  }
  0xe1   : > { %v1036_v35 = vpop.f32.mrf.mxu2  ;;  %v830_v36 = vpop.f32.mrf.mxu0 }
  0xe2   : > { %v934_v38 = vpop.f32.mrf.mxu1  ;;  %v831_v40 = vadd.f32 %v2175_v6, %v830_v36  ;;  %v1037_v47 = vadd.f32 %v1036_v35, %v933_v39 }
  0xe4   : > { %v935_v48 = vadd.f32 %v934_v38, %v831_v40  ;;  %v1122_v58 = vmax.f32 %v1037_v47, 0.0  ;;  %v1511_v40 = vld [vmem:[%s2065_s8 + $0x150] sm:$0xf] }
  0xe7   : > { %v2238_v49 = vpop.f32.mrf.mxu3 }
  0xe9   : > { %v1038_v50 = vpop.f32.mrf.mxu2  ;;  %v833_v54 = vpop.f32.mrf.mxu0 }
  0xea   : > { %v1039_v52 = vadd.f32 %v1038_v50, %v935_v48  ;;  %v937_v57 = vpop.f32.mrf.mxu1  ;;  %v834_v62 = vadd.f32 %v2175_v6, %v833_v54  ;;  %v1512_v50 = vor.u32 %v1710_v41, %v1511_v40  ;;  %v1516_v54 = vor.u32 %v1709_v42, %v1513_v43 }
  0xec   : > { %v1123_v59 = vmax.f32 %v1039_v52, 0.0  ;;  %872 = vmatmul.bf16.gmra.mxu0 %v1488_v51  ;;  %v938_v5 = vadd.f32 %v937_v57, %v834_v62 }
  0xed   : > { %976 = vmatmul.bf16.gmra.mxu1 %v1492_v55  ;;  %v1520_v55 = vor.u32 %v1711_v45, %v1519_v44 }
  0xee   : > { %v1766_v60 = vpack.c.bf16 %v1123_v59, %v1122_v58  ;;  %1080 = vmatmul.bf16.gmra.mxu2 %v1496_v56 }
  0xef   : > { %v992_v63 = vpop.f32.mrf.mxu3 }
  0xf0   : > { %1845 = vst [vmem:[%s2195_s27 + $0x18] sm:$0xff] %v1766_v60   ;;  %v2244_v0 = vadd.f32 %v992_v63, %v889_v61  ;;  %v899_v60 = vadd.f32 %v2175_v6, %v2214_v2 }
  0xf1   : > { %v1041_v1 = vpop.f32.mrf.mxu2  ;;  %v835_v3 = vpop.f32.mrf.mxu0 }
  0xf2   : > { %v939_v4 = vpop.f32.mrf.mxu1  ;;  %v836_v7 = vadd.f32 %v2175_v6, %v835_v3  ;;  %v1042_v15 = vadd.f32 %v1041_v1, %v938_v5 }
  0xf4   : > { %v940_v8 = vadd.f32 %v939_v4, %v836_v7  ;;  %v1124_v26 = vmax.f32 %v1042_v15, 0.0 }
  0xf7   : > { %v2253_v16 = vpop.f32.mrf.mxu3 }
  0xf9   : > { %v1043_v17 = vpop.f32.mrf.mxu2  ;;  %v838_v21 = vpop.f32.mrf.mxu0 }
  0xfa   : > { %v1044_v19 = vadd.f32 %v1043_v17, %v940_v8  ;;  %v942_v23 = vpop.f32.mrf.mxu1  ;;  %v839_v30 = vadd.f32 %v2175_v6, %v838_v21 }
  0xfc   : > { %v1125_v27 = vmax.f32 %v1044_v19, 0.0  ;;  %877 = vmatmul.bf16.gmra.mxu0 %v1500_v18  ;;  %v943_v38 = vadd.f32 %v942_v23, %v839_v30  ;;  %v904_v18 = vadd.f32 %v2175_v6, %v2229_v34 }
  0xfd   : > { %981 = vmatmul.bf16.gmra.mxu1 %v1504_v22 }
  0xfe   : > { %v1771_v28 = vpack.c.bf16 %v1125_v27, %v1124_v26  ;;  %1085 = vmatmul.bf16.gmra.mxu2 %v1508_v24 }
  0xff   : > { %v997_v31 = vpop.f32.mrf.mxu3 }
 0x100   : > { %1846 = vst [vmem:[%s2195_s27 + $0x20] sm:$0xff] %v1771_v28   ;;  %v2259_v32 = vadd.f32 %v997_v31, %v894_v29 }
 0x101   : > { %v1046_v33 = vpop.f32.mrf.mxu2  ;;  %v840_v35 = vpop.f32.mrf.mxu0 }
 0x102   : > { %v944_v36 = vpop.f32.mrf.mxu1  ;;  %v841_v39 = vadd.f32 %v2175_v6, %v840_v35  ;;  %v1047_v46 = vadd.f32 %v1046_v33, %v943_v38 }
 0x104   : > { %v945_v37 = vadd.f32 %v944_v36, %v841_v39  ;;  %v1126_v57 = vmax.f32 %v1047_v46, 0.0 }
 0x107   : > { %v2268_v47 = vpop.f32.mrf.mxu3 }
 0x109   : > { %v1048_v48 = vpop.f32.mrf.mxu2  ;;  %v843_v52 = vpop.f32.mrf.mxu0 }
 0x10a   : > { %v1049_v51 = vadd.f32 %v1048_v48, %v945_v37  ;;  %v947_v56 = vpop.f32.mrf.mxu1  ;;  %v844_v61 = vadd.f32 %v2175_v6, %v843_v52  ;;  %v891_v48 = vadd.f32 %v2175_v6, %v2189_v25 }
 0x10c   : > { %v1127_v58 = vmax.f32 %v1049_v51, 0.0  ;;  %882 = vmatmul.bf16.gmra.mxu0 %v1512_v50  ;;  %v948_v5 = vadd.f32 %v947_v56, %v844_v61  ;;  %v995_v50 = vadd.f32 %v2253_v16, %v891_v48 }
 0x10d   : > { %986 = vmatmul.bf16.gmra.mxu1 %v1516_v54 }
 0x10e   : > { %v1776_v59 = vpack.c.bf16 %v1127_v58, %v1126_v57  ;;  %1090 = vmatmul.bf16.gmra.mxu2 %v1520_v55 }
 0x10f   : > { %v1002_v62 = vpop.f32.mrf.mxu3 }
 0x110   : > { %1847 = vst [vmem:[%s2195_s27 + $0x28] sm:$0xff] %v1776_v59   ;;  %v2274_v63 = vadd.f32 %v1002_v62, %v899_v60 }
 0x111   : > { %v1051_v1 = vpop.f32.mrf.mxu2  ;;  %v845_v3 = vpop.f32.mrf.mxu0 }
 0x112   : > { %v949_v4 = vpop.f32.mrf.mxu1  ;;  %v846_v7 = vadd.f32 %v2175_v6, %v845_v3  ;;  %v1052_v9 = vadd.f32 %v1051_v1, %v948_v5 }
 0x114   : > { %v950_v10 = vadd.f32 %v949_v4, %v846_v7  ;;  %v1128_v15 = vmax.f32 %v1052_v9, 0.0 }
 0x117   : > { %v2277_v11 = vpop.f32.mrf.mxu3 }
 0x119   : > { %v1053_v12 = vpop.f32.mrf.mxu2  ;;  %v848_v2 = vpop.f32.mrf.mxu0 }
 0x11a   : > { %v1054_v13 = vadd.f32 %v1053_v12, %v950_v10  ;;  %v952_v14 = vpop.f32.mrf.mxu1  ;;  %v849_v19 = vadd.f32 %v2175_v6, %v848_v2 }
 0x11c   : > { %v1129_v8 = vmax.f32 %v1054_v13, 0.0  ;;  %v953_v27 = vadd.f32 %v952_v14, %v849_v19  ;;  %v896_v13 = vadd.f32 %v2175_v6, %v2210_v53 }
 0x11e   : > { %v1781_v17 = vpack.c.bf16 %v1129_v8, %v1128_v15  ;;  %v1000_v2 = vadd.f32 %v2268_v47, %v896_v13 }
 0x11f   : > { %v1007_v21 = vpop.f32.mrf.mxu3 }
 0x120   : > { %1848 = vst [vmem:[%s2195_s27 + $0x30] sm:$0xff] %v1781_v17   ;;  %v2283_v22 = vadd.f32 %v1007_v21, %v904_v18 }
 0x121   : > { %v1056_v24 = vpop.f32.mrf.mxu2  ;;  %v850_v23 = vpop.f32.mrf.mxu0 }
 0x122   : > { %v954_v26 = vpop.f32.mrf.mxu1  ;;  %v851_v28 = vadd.f32 %v2175_v6, %v850_v23  ;;  %v1057_v29 = vadd.f32 %v1056_v24, %v953_v27 }
 0x124   : > { %v955_v30 = vadd.f32 %v954_v26, %v851_v28  ;;  %v1130_v38 = vmax.f32 %v1057_v29, 0.0 }
 0x127   : > { %v2286_v31 = vpop.f32.mrf.mxu3 }
 0x129   : > { %v1058_v33 = vpop.f32.mrf.mxu2  ;;  %v853_v34 = vpop.f32.mrf.mxu0 }
 0x12a   : > { %v1059_v35 = vadd.f32 %v1058_v33, %v955_v30  ;;  %v957_v36 = vpop.f32.mrf.mxu1  ;;  %v854_v41 = vadd.f32 %v2175_v6, %v853_v34 }
 0x12c   : > { %v1131_v39 = vmax.f32 %v1059_v35, 0.0  ;;  %v958_v46 = vadd.f32 %v957_v36, %v854_v41 }
 0x12e   : > { %v1786_v40 = vpack.c.bf16 %v1131_v39, %v1130_v38  ;;  %v901_v39 = vadd.f32 %v2175_v6, %v2225_v20 }
 0x12f   : > { %v1096_v42 = vpop.f32.mrf.mxu3 }
 0x130   : > { %1849 = vst [vmem:[%s2195_s27 + $0x38] sm:$0xff] %v1786_v40   ;;  %v1097_v51 = vadd.f32 %v1096_v42, %v2244_v0  ;;  %v1005_v40 = vadd.f32 %v2277_v11, %v901_v39 }
 0x131   : > { %v1061_v43 = vpop.f32.mrf.mxu2  ;;  %v855_v44 = vpop.f32.mrf.mxu0 }
 0x132   : > { %v959_v45 = vpop.f32.mrf.mxu1  ;;  %v856_v37 = vadd.f32 %v2175_v6, %v855_v44  ;;  %v1062_v52 = vadd.f32 %v1061_v43, %v958_v46  ;;  %v1146_v60 = vmax.f32 %v1097_v51, 0.0 }
 0x134   : > { %v960_v54 = vadd.f32 %v959_v45, %v856_v37  ;;  %v1132_v1 = vmax.f32 %v1062_v52, 0.0 }
 0x137   : > { %v1098_v55 = vpop.f32.mrf.mxu3 }
 0x138   : > { %v1099_v57 = vadd.f32 %v1098_v55, %v995_v50 }
 0x139   : > { %v1063_v56 = vpop.f32.mrf.mxu2  ;;  %v858_v59 = vpop.f32.mrf.mxu0 }
 0x13a   : > { %v1064_v58 = vadd.f32 %v1063_v56, %v960_v54  ;;  %v1147_v61 = vmax.f32 %v1099_v57, 0.0  ;;  %v962_v62 = vpop.f32.mrf.mxu1  ;;  %v859_v16 = vadd.f32 %v2175_v6, %v858_v59 }
 0x13c   : > { %v1133_v3 = vmax.f32 %v1064_v58, 0.0  ;;  %v1826_v4 = vpack.c.bf16 %v1147_v61, %v1146_v60  ;;  %v963_v10 = vadd.f32 %v962_v62, %v859_v16  ;;  %v906_v62 = vadd.f32 %v2175_v6, %v2238_v49 }
 0x13e   : > { %v1791_v25 = vpack.c.bf16 %v1133_v3, %v1132_v1  ;;  %1857 = vst [vmem:[%s2195_s27 + $0x78] sm:$0xff] %v1826_v4   ;;  %v1010_v1 = vadd.f32 %v2286_v31, %v906_v62 }
 0x13f   : > { %v1101_v0 = vpop.f32.mrf.mxu3 }
 0x140   : > { %1850 = vst [vmem:[%s2195_s27 + $0x40] sm:$0xff] %v1791_v25   ;;  %v1102_v14 = vadd.f32 %v1101_v0, %v2259_v32 }
 0x141   : > { %v1066_v5 = vpop.f32.mrf.mxu2  ;;  %v860_v7 = vpop.f32.mrf.mxu0 }
 0x142   : > { %v964_v9 = vpop.f32.mrf.mxu1  ;;  %v861_v12 = vadd.f32 %v2175_v6, %v860_v7  ;;  %v1067_v15 = vadd.f32 %v1066_v5, %v963_v10  ;;  %v1148_v23 = vmax.f32 %v1102_v14, 0.0 }
 0x144   : > { %v965_v8 = vadd.f32 %v964_v9, %v861_v12  ;;  %v1134_v28 = vmax.f32 %v1067_v15, 0.0 }
 0x147   : > { %v1103_v17 = vpop.f32.mrf.mxu3 }
 0x148   : > { %v1104_v19 = vadd.f32 %v1103_v17, %v1000_v2 }
 0x149   : > { %v1068_v18 = vpop.f32.mrf.mxu2  ;;  %v863_v24 = vpop.f32.mrf.mxu0 }
 0x14a   : > { %v1069_v21 = vadd.f32 %v1068_v18, %v965_v8  ;;  %v1149_v26 = vmax.f32 %v1104_v19, 0.0  ;;  %v967_v27 = vpop.f32.mrf.mxu1  ;;  %v864_v47 = vadd.f32 %v2175_v6, %v863_v24 }
 0x14c   : > { %v1135_v29 = vmax.f32 %v1069_v21, 0.0  ;;  %v1831_v30 = vpack.c.bf16 %v1149_v26, %v1148_v23  ;;  %v968_v36 = vadd.f32 %v967_v27, %v864_v47 }
 0x14e   : > { %v1796_v53 = vpack.c.bf16 %v1135_v29, %v1134_v28  ;;  %1858 = vst [vmem:[%s2195_s27 + $0x80] sm:$0xff] %v1831_v30  }
 0x14f   : > { %v1106_v32 = vpop.f32.mrf.mxu3 }
 0x150   : > { %1851 = vst [vmem:[%s2195_s27 + $0x48] sm:$0xff] %v1796_v53   ;;  %v1107_v41 = vadd.f32 %v1106_v32, %v2274_v63 }
 0x151   : > { %v1071_v33 = vpop.f32.mrf.mxu2  ;;  %v865_v35 = vpop.f32.mrf.mxu0 }
 0x152   : > { %v969_v34 = vpop.f32.mrf.mxu1  ;;  %v866_v38 = vadd.f32 %v2175_v6, %v865_v35  ;;  %v1072_v42 = vadd.f32 %v1071_v33, %v968_v36  ;;  %v1150_v50 = vmax.f32 %v1107_v41, 0.0 }
 0x154   : > { %v970_v43 = vadd.f32 %v969_v34, %v866_v38  ;;  %v1136_v54 = vmax.f32 %v1072_v42, 0.0 }
 0x157   : > { %v1108_v44 = vpop.f32.mrf.mxu3 }
 0x158   : > { %v1109_v46 = vadd.f32 %v1108_v44, %v1005_v40 }
 0x159   : > { %v1073_v45 = vpop.f32.mrf.mxu2  ;;  %v868_v48 = vpop.f32.mrf.mxu0 }
 0x15a   : > { %v1074_v37 = vadd.f32 %v1073_v45, %v970_v43  ;;  %v1151_v51 = vmax.f32 %v1109_v46, 0.0  ;;  %v972_v52 = vpop.f32.mrf.mxu1  ;;  %v869_v11 = vadd.f32 %v2175_v6, %v868_v48 }
 0x15c   : > { %v1137_v55 = vmax.f32 %v1074_v37, 0.0  ;;  %v1836_v56 = vpack.c.bf16 %v1151_v51, %v1150_v50  ;;  %v973_v60 = vadd.f32 %v972_v52, %v869_v11 }
 0x15e   : > { %v1801_v20 = vpack.c.bf16 %v1137_v55, %v1136_v54  ;;  %1859 = vst [vmem:[%s2195_s27 + $0x88] sm:$0xff] %v1836_v56  }
 0x15f   : > { %v1111_v63 = vpop.f32.mrf.mxu3 }
 0x160   : > { %1852 = vst [vmem:[%s2195_s27 + $0x50] sm:$0xff] %v1801_v20   ;;  %v1112_v3 = vadd.f32 %v1111_v63, %v2283_v22 }
 0x161   : > { %v1076_v57 = vpop.f32.mrf.mxu2  ;;  %v870_v58 = vpop.f32.mrf.mxu0 }
 0x162   : > { %v974_v59 = vpop.f32.mrf.mxu1  ;;  %v871_v61 = vadd.f32 %v2175_v6, %v870_v58  ;;  %v1077_v4 = vadd.f32 %v1076_v57, %v973_v60  ;;  %v1152_v10 = vmax.f32 %v1112_v3, 0.0 }
 0x164   : > { %v975_v25 = vadd.f32 %v974_v59, %v871_v61  ;;  %v1138_v2 = vmax.f32 %v1077_v4, 0.0 }
 0x167   : > { %v1113_v16 = vpop.f32.mrf.mxu3 }
 0x168   : > { %v1114_v5 = vadd.f32 %v1113_v16, %v1010_v1 }
 0x169   : > { %v1078_v0 = vpop.f32.mrf.mxu2  ;;  %v873_v9 = vpop.f32.mrf.mxu0 }
 0x16a   : > { %v1079_v7 = vadd.f32 %v1078_v0, %v975_v25  ;;  %v1153_v12 = vmax.f32 %v1114_v5, 0.0  ;;  %v977_v13 = vpop.f32.mrf.mxu1  ;;  %v874_v22 = vadd.f32 %v2175_v6, %v873_v9 }
 0x16c   : > { %v1139_v14 = vmax.f32 %v1079_v7, 0.0  ;;  %v1841_v15 = vpack.c.bf16 %v1153_v12, %v1152_v10  ;;  %v978_v18 = vadd.f32 %v977_v13, %v874_v22 }
 0x16e   : > { %v1806_v49 = vpack.c.bf16 %v1139_v14, %v1138_v2  ;;  %1860 = vst [vmem:[%s2195_s27 + $0x90] sm:$0xff] %v1841_v15  }
 0x170   : > { %1853 = vst [vmem:[%s2195_s27 + $0x58] sm:$0xff] %v1806_v49  }
 0x171   : > { %v1081_v31 = vpop.f32.mrf.mxu2  ;;  %v875_v8 = vpop.f32.mrf.mxu0 }
 0x172   : > { %v979_v17 = vpop.f32.mrf.mxu1  ;;  %v876_v19 = vadd.f32 %v2175_v6, %v875_v8  ;;  %v1082_v21 = vadd.f32 %v1081_v31, %v978_v18 }
 0x174   : > { %v980_v24 = vadd.f32 %v979_v17, %v876_v19  ;;  %v1140_v29 = vmax.f32 %v1082_v21, 0.0 }
 0x179   : > { %v1083_v23 = vpop.f32.mrf.mxu2  ;;  %v878_v27 = vpop.f32.mrf.mxu0 }
 0x17a   : > { %v1084_v26 = vadd.f32 %v1083_v23, %v980_v24  ;;  %v982_v28 = vpop.f32.mrf.mxu1  ;;  %v879_v47 = vadd.f32 %v2175_v6, %v878_v27 }
 0x17c   : > { %v1141_v30 = vmax.f32 %v1084_v26, 0.0  ;;  %v983_v34 = vadd.f32 %v982_v28, %v879_v47 }
 0x17e   : > { %v1811_v53 = vpack.c.bf16 %v1141_v30, %v1140_v29 }
 0x180   : > { %1854 = vst [vmem:[%s2195_s27 + $0x60] sm:$0xff] %v1811_v53  }
 0x181   : > { %v1086_v32 = vpop.f32.mrf.mxu2  ;;  %v880_v33 = vpop.f32.mrf.mxu0 }
 0x182   : > { %v984_v35 = vpop.f32.mrf.mxu1  ;;  %v881_v36 = vadd.f32 %v2175_v6, %v880_v33  ;;  %v1087_v38 = vadd.f32 %v1086_v32, %v983_v34 }
 0x184   : > { %v985_v39 = vadd.f32 %v984_v35, %v881_v36  ;;  %v1142_v43 = vmax.f32 %v1087_v38, 0.0 }
 0x189   : > { %v1088_v40 = vpop.f32.mrf.mxu2  ;;  %v883_v42 = vpop.f32.mrf.mxu0 }
 0x18a   : > { %v1089_v41 = vadd.f32 %v1088_v40, %v985_v39  ;;  %v987_v45 = vpop.f32.mrf.mxu1  ;;  %v884_v37 = vadd.f32 %v2175_v6, %v883_v42 }
 0x18c   : > { %v1143_v44 = vmax.f32 %v1089_v41, 0.0  ;;  %v988_v51 = vadd.f32 %v987_v45, %v884_v37 }
 0x18e   : > { %v1816_v46 = vpack.c.bf16 %v1143_v44, %v1142_v43 }
 0x190   : > { %1855 = vst [vmem:[%s2195_s27 + $0x68] sm:$0xff] %v1816_v46  }
 0x191   : > { %v1091_v48 = vpop.f32.mrf.mxu2  ;;  %v885_v50 = vpop.f32.mrf.mxu0 }
 0x192   : > { %v886_v52 = vadd.f32 %v2175_v6, %v885_v50  ;;  %v989_v54 = vpop.f32.mrf.mxu1  ;;  %v1092_v55 = vadd.f32 %v1091_v48, %v988_v51 }
 0x194   : > { %v990_v56 = vadd.f32 %v989_v54, %v886_v52  ;;  %v1144_v63 = vmax.f32 %v1092_v55, 0.0 }
 0x199   : > { %v1093_v20 = vpop.f32.mrf.mxu2 }
 0x19a   : > { %v1094_v11 = vadd.f32 %v1093_v20, %v990_v56 }
 0x19c   : > { %v1145_v57 = vmax.f32 %v1094_v11, 0.0 }
 0x19e   : > { %v1821_v58 = vpack.c.bf16 %v1145_v57, %v1144_v63 }
 0x1a0   : > { %1856 = vst [vmem:[%s2195_s27 + $0x70] sm:$0xff] %v1821_v58  }
 0x1a1 PF: > { %s13_s14 = sadd.s32 1, %s1933_s14   ;;  %s2343_s12 = smov %s1929_s13 }
 0x1a2   : > { %p10_p5 = scmp.ge.s32.totalorder %s13_s14, 4   ;;  %s2344_s13 = smov %s2346_s15 }
 0x1a4   :  { %12 = sbr.rel (!%p10_p5) target bundleno = 2 (0x2), region = 68 }

// kernel: _lambda_.7
= control target key start
LH: loop header
LB: loop body
LE: loop exit
PB: predicated region body
PF: predicated region fallthrough
CT: control target
= control target key end

     0   :  { %s1396_s1 = inlined_call_operand.vmem [shape: bf16[512,128], index: 1, kind: input, shape index: {}]   ;;  %s1397_s2 = inlined_call_operand.vmem [shape: f32[1,128], index: 2, kind: input, shape index: {}]   ;;  %s1398_s0 = inlined_call_operand.vmem [shape: bf16[128,512], index: 0, kind: input, shape index: {}]   ;;  %s1399_s3 = inlined_call_operand.vmem [shape: f32[128,128], index: 3, kind: output, shape index: {}]  }
   0x1   :  { %v993_v0 = vld [vmem:[%s1396_s1 + $0x38] sm:$0xff]  ;;  %v992_v4 = vld [vmem:[%s1396_s1 + $0x30] sm:$0xff]  ;;  %v991_v8 = vld [vmem:[%s1396_s1 + $0x28] sm:$0xff] }
   0x2   :  { %v1001_v1 = vld [vmem:[%s1396_s1 + $0x78] sm:$0xff]  ;;  %466 = vmatpush.bf16.msra.mxu0 %v993_v0  ;;  %v1000_v5 = vld [vmem:[%s1396_s1 + $0x70] sm:$0xff]  ;;  %v999_v9 = vld [vmem:[%s1396_s1 + $0x68] sm:$0xff] }
   0x3   :  { %v1009_v2 = vld [vmem:[%s1396_s1 + $0xb8] sm:$0xff]  ;;  %515 = vmatpush.bf16.msra.mxu1 %v1001_v1  ;;  %v1008_v6 = vld [vmem:[%s1396_s1 + $0xb0] sm:$0xff]  ;;  %v1007_v10 = vld [vmem:[%s1396_s1 + $0xa8] sm:$0xff] }
   0x4   :  { %v1017_v3 = vld [vmem:[%s1396_s1 + $0xf8] sm:$0xff]  ;;  %564 = vmatpush.bf16.msra.mxu2 %v1009_v2  ;;  %v1016_v7 = vld [vmem:[%s1396_s1 + $0xf0] sm:$0xff]  ;;  %v1015_v11 = vld [vmem:[%s1396_s1 + $0xe8] sm:$0xff] }
   0x5   :  { %613 = vmatpush.bf16.msra.mxu3 %v1017_v3  ;;  %v990_v12 = vld [vmem:[%s1396_s1 + $0x20] sm:$0xff]  ;;  %v989_v16 = vld [vmem:[%s1396_s1 + $0x18] sm:$0xff]  ;;  %v988_v20 = vld [vmem:[%s1396_s1 + $0x10] sm:$0xff] }
   0x6   :  { %467 = vmatpush.bf16.msra.mxu0 %v992_v4  ;;  %v998_v13 = vld [vmem:[%s1396_s1 + $0x60] sm:$0xff]  ;;  %v997_v17 = vld [vmem:[%s1396_s1 + $0x58] sm:$0xff]  ;;  %v996_v21 = vld [vmem:[%s1396_s1 + $0x50] sm:$0xff] }
   0x7   :  { %516 = vmatpush.bf16.msra.mxu1 %v1000_v5  ;;  %v1006_v14 = vld [vmem:[%s1396_s1 + $0xa0] sm:$0xff]  ;;  %v1005_v18 = vld [vmem:[%s1396_s1 + $0x98] sm:$0xff]  ;;  %v1004_v22 = vld [vmem:[%s1396_s1 + $0x90] sm:$0xff] }
   0x8   :  { %565 = vmatpush.bf16.msra.mxu2 %v1008_v6  ;;  %v1014_v15 = vld [vmem:[%s1396_s1 + $0xe0] sm:$0xff]  ;;  %v1013_v19 = vld [vmem:[%s1396_s1 + $0xd8] sm:$0xff]  ;;  %v1012_v23 = vld [vmem:[%s1396_s1 + $0xd0] sm:$0xff] }
   0x9   :  { %614 = vmatpush.bf16.msra.mxu3 %v1016_v7  ;;  %v987_v24 = vld [vmem:[%s1396_s1 + $0x8] sm:$0xff]  ;;  %v986_v28 = vld [vmem:[%s1396_s1] sm:$0xff]  ;;  %v956_v33 = vld [vmem:[%s1398_s0 + $0xc] sm:$0xf0] }
   0xa   :  { %468 = vmatpush.bf16.msra.mxu0 %v991_v8  ;;  %v995_v25 = vld [vmem:[%s1396_s1 + $0x48] sm:$0xff]  ;;  %v994_v29 = vld [vmem:[%s1396_s1 + $0x40] sm:$0xff]  ;;  %v702_v35 = vld [vmem:[%s1398_s0 + $0x10] sm:$0xf0] }
   0xb   :  { %517 = vmatpush.bf16.msra.mxu1 %v999_v9  ;;  %v1003_v26 = vld [vmem:[%s1396_s1 + $0x88] sm:$0xff]  ;;  %v1002_v30 = vld [vmem:[%s1396_s1 + $0x80] sm:$0xff]  ;;  %v957_v37 = vld [vmem:[%s1398_s0 + $0x14] sm:$0xf0] }
   0xc   :  { %566 = vmatpush.bf16.msra.mxu2 %v1007_v10  ;;  %v1011_v27 = vld [vmem:[%s1396_s1 + $0xc8] sm:$0xff]  ;;  %v1010_v31 = vld [vmem:[%s1396_s1 + $0xc0] sm:$0xff]  ;;  %v710_v39 = vld [vmem:[%s1398_s0 + $0x18] sm:$0xf0] }
   0xd   :  { %615 = vmatpush.bf16.msra.mxu3 %v1015_v11  ;;  %v700_v32 = vld [vmem:[%s1398_s0] sm:$0xf]  ;;  %v954_v34 = vld [vmem:[%s1398_s0 + $0x4] sm:$0xf]  ;;  %v708_v36 = vld [vmem:[%s1398_s0 + $0x8] sm:$0xf] }
   0xe   :  { %469 = vmatpush.bf16.msra.mxu0 %v990_v12  ;;  %v955_v38 = vld [vmem:[%s1398_s0 + $0xc] sm:$0xf]  ;;  %v701_v40 = vor.u32 %v956_v33, %v700_v32  ;;  %v705_v41 = vor.u32 %v954_v34, %v702_v35  ;;  %v709_v42 = vor.u32 %v957_v37, %v708_v36  ;;  %v716_v44 = vld [vmem:[%s1398_s0 + $0x20] sm:$0xf]  ;;  %v960_v45 = vld [vmem:[%s1398_s0 + $0x2c] sm:$0xf0] }
   0xf   :  { %518 = vmatpush.bf16.msra.mxu1 %v998_v13  ;;  %v713_v43 = vor.u32 %v955_v38, %v710_v39  ;;  %v958_v46 = vld [vmem:[%s1398_s0 + $0x24] sm:$0xf]  ;;  %v718_v47 = vld [vmem:[%s1398_s0 + $0x30] sm:$0xf0]  ;;  %v724_v48 = vld [vmem:[%s1398_s0 + $0x28] sm:$0xf]  ;;  %v717_v52 = vor.u32 %v960_v45, %v716_v44 }
  0x10   :  { %567 = vmatpush.bf16.msra.mxu2 %v1006_v14  ;;  %v961_v49 = vld [vmem:[%s1398_s0 + $0x34] sm:$0xf0]  ;;  %v959_v50 = vld [vmem:[%s1398_s0 + $0x2c] sm:$0xf]  ;;  %v726_v51 = vld [vmem:[%s1398_s0 + $0x38] sm:$0xf0]  ;;  %v721_v53 = vor.u32 %v958_v46, %v718_v47 }
  0x11   :  { %616 = vmatpush.bf16.msra.mxu3 %v1014_v15  ;;  %v725_v54 = vor.u32 %v961_v49, %v724_v48  ;;  %v729_v55 = vor.u32 %v959_v50, %v726_v51  ;;  %v732_v56 = vld [vmem:[%s1398_s0 + $0x40] sm:$0xf]  ;;  %v964_v57 = vld [vmem:[%s1398_s0 + $0x4c] sm:$0xf0]  ;;  %v962_v58 = vld [vmem:[%s1398_s0 + $0x44] sm:$0xf] }
  0x12   :  { %470 = vmatpush.bf16.msra.mxu0 %v989_v16  ;;  %v734_v59 = vld [vmem:[%s1398_s0 + $0x50] sm:$0xf0]  ;;  %v740_v60 = vld [vmem:[%s1398_s0 + $0x48] sm:$0xf]  ;;  %v965_v61 = vld [vmem:[%s1398_s0 + $0x54] sm:$0xf0]  ;;  %v733_v0 = vor.u32 %v964_v57, %v732_v56 }
  0x13   :  { %519 = vmatpush.bf16.msra.mxu1 %v997_v17  ;;  %v963_v62 = vld [vmem:[%s1398_s0 + $0x4c] sm:$0xf]  ;;  %v742_v63 = vld [vmem:[%s1398_s0 + $0x58] sm:$0xf0]  ;;  %v737_v1 = vor.u32 %v962_v58, %v734_v59  ;;  %v741_v2 = vor.u32 %v965_v61, %v740_v60  ;;  %v748_v4 = vld [vmem:[%s1398_s0 + $0x60] sm:$0xf] }
  0x14   :  { %568 = vmatpush.bf16.msra.mxu2 %v1005_v18  ;;  %v745_v3 = vor.u32 %v963_v62, %v742_v63  ;;  %v968_v5 = vld [vmem:[%s1398_s0 + $0x6c] sm:$0xf0]  ;;  %v966_v6 = vld [vmem:[%s1398_s0 + $0x64] sm:$0xf]  ;;  %v750_v7 = vld [vmem:[%s1398_s0 + $0x70] sm:$0xf0] }
  0x15   :  { %617 = vmatpush.bf16.msra.mxu3 %v1013_v19  ;;  %v756_v8 = vld [vmem:[%s1398_s0 + $0x68] sm:$0xf]  ;;  %v969_v9 = vld [vmem:[%s1398_s0 + $0x74] sm:$0xf0]  ;;  %v967_v10 = vld [vmem:[%s1398_s0 + $0x6c] sm:$0xf]  ;;  %v749_v12 = vor.u32 %v968_v5, %v748_v4  ;;  %v753_v13 = vor.u32 %v966_v6, %v750_v7 }
  0x16   :  { %471 = vmatpush.bf16.msra.mxu0 %v988_v20  ;;  %v758_v11 = vld [vmem:[%s1398_s0 + $0x78] sm:$0xf0]  ;;  %v757_v14 = vor.u32 %v969_v9, %v756_v8  ;;  %v764_v16 = vld [vmem:[%s1398_s0 + $0x80] sm:$0xf]  ;;  %v972_v17 = vld [vmem:[%s1398_s0 + $0x8c] sm:$0xf0] }
  0x17   :  { %520 = vmatpush.bf16.msra.mxu1 %v996_v21  ;;  %v761_v15 = vor.u32 %v967_v10, %v758_v11  ;;  %v970_v18 = vld [vmem:[%s1398_s0 + $0x84] sm:$0xf]  ;;  %v766_v19 = vld [vmem:[%s1398_s0 + $0x90] sm:$0xf0]  ;;  %v772_v20 = vld [vmem:[%s1398_s0 + $0x88] sm:$0xf] }
  0x18   :  { %569 = vmatpush.bf16.msra.mxu2 %v1004_v22  ;;  %v973_v21 = vld [vmem:[%s1398_s0 + $0x94] sm:$0xf0]  ;;  %v971_v22 = vld [vmem:[%s1398_s0 + $0x8c] sm:$0xf]  ;;  %v788_v32 = vld [vmem:[%s1398_s0 + $0xa8] sm:$0xf] }
  0x19   :  { %618 = vmatpush.bf16.msra.mxu3 %v1012_v23  ;;  %v774_v23 = vld [vmem:[%s1398_s0 + $0x98] sm:$0xf0]  ;;  %v977_v33 = vld [vmem:[%s1398_s0 + $0xb4] sm:$0xf0]  ;;  %v975_v34 = vld [vmem:[%s1398_s0 + $0xac] sm:$0xf] }
  0x1a   :  { %472 = vmatpush.bf16.msra.mxu0 %v987_v24  ;;  %v765_v24 = vor.u32 %v972_v17, %v764_v16  ;;  %v790_v35 = vld [vmem:[%s1398_s0 + $0xb8] sm:$0xf0]  ;;  %v789_v38 = vor.u32 %v977_v33, %v788_v32  ;;  %v804_v44 = vld [vmem:[%s1398_s0 + $0xc8] sm:$0xf]  ;;  %v981_v45 = vld [vmem:[%s1398_s0 + $0xd4] sm:$0xf0] }
  0x1b   :  { %521 = vmatpush.bf16.msra.mxu1 %v995_v25  ;;  %v769_v25 = vor.u32 %v970_v18, %v766_v19  ;;  %v793_v39 = vor.u32 %v975_v34, %v790_v35  ;;  %v979_v46 = vld [vmem:[%s1398_s0 + $0xcc] sm:$0xf]  ;;  %v806_v47 = vld [vmem:[%s1398_s0 + $0xd8] sm:$0xf0]  ;;  %v805_v50 = vor.u32 %v981_v45, %v804_v44  ;;  %v820_v56 = vld [vmem:[%s1398_s0 + $0xe8] sm:$0xf] }
  0x1c   :  { %570 = vmatpush.bf16.msra.mxu2 %v1003_v26  ;;  %v773_v26 = vor.u32 %v973_v21, %v772_v20  ;;  %v809_v51 = vor.u32 %v979_v46, %v806_v47  ;;  %v985_v57 = vld [vmem:[%s1398_s0 + $0xf4] sm:$0xf0]  ;;  %v983_v58 = vld [vmem:[%s1398_s0 + $0xec] sm:$0xf]  ;;  %v822_v59 = vld [vmem:[%s1398_s0 + $0xf8] sm:$0xf0] }
  0x1d   :  { %619 = vmatpush.bf16.msra.mxu3 %v1011_v27  ;;  %v777_v27 = vor.u32 %v971_v22, %v774_v23  ;;  %v821_v62 = vor.u32 %v985_v57, %v820_v56  ;;  %v825_v63 = vor.u32 %v983_v58, %v822_v59 }
  0x1e   :  { %473 = vmatpush.bf16.msra.mxu0 %v986_v28  ;;  %v780_v28 = vld [vmem:[%s1398_s0 + $0xa0] sm:$0xf] }
  0x1f   :  { %522 = vmatpush.bf16.msra.mxu1 %v994_v29  ;;  %v976_v29 = vld [vmem:[%s1398_s0 + $0xac] sm:$0xf0] }
  0x20   :  { %571 = vmatpush.bf16.msra.mxu2 %v1002_v30  ;;  %v974_v30 = vld [vmem:[%s1398_s0 + $0xa4] sm:$0xf]  ;;  %v781_v36 = vor.u32 %v976_v29, %v780_v28 }
  0x21   :  { %620 = vmatpush.bf16.msra.mxu3 %v1010_v31  ;;  %474 = vmatmul.bf16.vlgmr.msra.gmra.mxu0 %v701_v40  ;;  %v782_v31 = vld [vmem:[%s1398_s0 + $0xb0] sm:$0xf0]  ;;  %v796_v40 = vld [vmem:[%s1398_s0 + $0xc0] sm:$0xf] }
  0x22   :  { %523 = vmatmul.bf16.vlgmr.msra.gmra.mxu1 %v705_v41  ;;  %v785_v37 = vor.u32 %v974_v30, %v782_v31  ;;  %v980_v41 = vld [vmem:[%s1398_s0 + $0xcc] sm:$0xf0] }
  0x23   :  { %572 = vmatmul.bf16.vlgmr.msra.gmra.mxu2 %v709_v42  ;;  %v978_v42 = vld [vmem:[%s1398_s0 + $0xc4] sm:$0xf]  ;;  %v797_v48 = vor.u32 %v980_v41, %v796_v40 }
  0x24   :  { %621 = vmatmul.bf16.vlgmr.msra.gmra.mxu3 %v713_v43  ;;  %v798_v43 = vld [vmem:[%s1398_s0 + $0xd0] sm:$0xf0] }
  0x25   :  { %v801_v49 = vor.u32 %v978_v42, %v798_v43 }
  0x31   :  { %479 = vmatmul.bf16.gmra.mxu0 %v717_v52  ;;  %v812_v52 = vld [vmem:[%s1398_s0 + $0xe0] sm:$0xf] }
  0x32   :  { %528 = vmatmul.bf16.gmra.mxu1 %v721_v53  ;;  %v984_v53 = vld [vmem:[%s1398_s0 + $0xec] sm:$0xf0] }
  0x33   :  { %577 = vmatmul.bf16.gmra.mxu2 %v725_v54  ;;  %v982_v54 = vld [vmem:[%s1398_s0 + $0xe4] sm:$0xf]  ;;  %v813_v60 = vor.u32 %v984_v53, %v812_v52 }
  0x34   :  { %626 = vmatmul.bf16.gmra.mxu3 %v729_v55  ;;  %v814_v55 = vld [vmem:[%s1398_s0 + $0xf0] sm:$0xf0] }
  0x35   :  { %v817_v61 = vor.u32 %v982_v54, %v814_v55 }
  0x41   :  { %484 = vmatmul.bf16.gmra.mxu0 %v733_v0  ;;  %v1330_v0 = vld [vmem:[%s1397_s2] ss:$0 sm:$0xff] }
  0x42   :  { %533 = vmatmul.bf16.gmra.mxu1 %v737_v1 }
  0x43   :  { %582 = vmatmul.bf16.gmra.mxu2 %v741_v2 }
  0x44   :  { %631 = vmatmul.bf16.gmra.mxu3 %v745_v3 }
  0x51   :  { %489 = vmatmul.bf16.gmra.mxu0 %v749_v12 }
  0x52   :  { %538 = vmatmul.bf16.gmra.mxu1 %v753_v13 }
  0x53   :  { %587 = vmatmul.bf16.gmra.mxu2 %v757_v14 }
  0x54   :  { %636 = vmatmul.bf16.gmra.mxu3 %v761_v15 }
  0x61   :  { %494 = vmatmul.bf16.gmra.mxu0 %v765_v24 }
  0x62   :  { %543 = vmatmul.bf16.gmra.mxu1 %v769_v25 }
  0x63   :  { %592 = vmatmul.bf16.gmra.mxu2 %v773_v26 }
  0x64   :  { %641 = vmatmul.bf16.gmra.mxu3 %v777_v27 }
  0x71   :  { %499 = vmatmul.bf16.gmra.mxu0 %v781_v36 }
  0x72   :  { %548 = vmatmul.bf16.gmra.mxu1 %v785_v37 }
  0x73   :  { %597 = vmatmul.bf16.gmra.mxu2 %v789_v38 }
  0x74   :  { %646 = vmatmul.bf16.gmra.mxu3 %v793_v39 }
  0x81   :  { %504 = vmatmul.bf16.gmra.mxu0 %v797_v48 }
  0x82   :  { %553 = vmatmul.bf16.gmra.mxu1 %v801_v49 }
  0x83   :  { %602 = vmatmul.bf16.gmra.mxu2 %v805_v50 }
  0x84   :  { %651 = vmatmul.bf16.gmra.mxu3 %v809_v51 }
  0x91   :  { %509 = vmatmul.bf16.gmra.mxu0 %v813_v60 }
  0x92   :  { %558 = vmatmul.bf16.gmra.mxu1 %v817_v61 }
  0x93   :  { %607 = vmatmul.bf16.gmra.mxu2 %v821_v62 }
  0x94   :  { %656 = vmatmul.bf16.gmra.mxu3 %v825_v63 }
  0x9e   :  { %v475_v1 = vpop.f32.mrf.mxu0 }
  0x9f   :  { %v524_v2 = vpop.f32.mrf.mxu1  ;;  %v476_v3 = vadd.f32 %v1330_v0, %v475_v1 }
  0xa1   :  { %v525_v4 = vadd.f32 %v524_v2, %v476_v3 }
  0xa6   :  { %v573_v5 = vpop.f32.mrf.mxu2  ;;  %v477_v8 = vpop.f32.mrf.mxu0 }
  0xa7   :  { %v622_v6 = vpop.f32.mrf.mxu3  ;;  %v574_v7 = vadd.f32 %v573_v5, %v525_v4  ;;  %v526_v9 = vpop.f32.mrf.mxu1  ;;  %v478_v11 = vadd.f32 %v1330_v0, %v477_v8 }
  0xa9   :  { %v623_v10 = vadd.f32 %v622_v6, %v574_v7  ;;  %v527_v13 = vadd.f32 %v526_v9, %v478_v11 }
  0xab   :  { %v662_v12 = vmax.f32 %v623_v10, 0.0 }
  0xad   :  { %678 = vst [vmem:[%s1399_s3] sm:$0xff] %v662_v12 }
  0xae   :  { %v575_v14 = vpop.f32.mrf.mxu2  ;;  %v480_v17 = vpop.f32.mrf.mxu0 }
  0xaf   :  { %v624_v15 = vpop.f32.mrf.mxu3  ;;  %v576_v16 = vadd.f32 %v575_v14, %v527_v13  ;;  %v529_v18 = vpop.f32.mrf.mxu1  ;;  %v481_v19 = vadd.f32 %v1330_v0, %v480_v17 }
  0xb1   :  { %v625_v20 = vadd.f32 %v624_v15, %v576_v16  ;;  %v530_v22 = vadd.f32 %v529_v18, %v481_v19 }
  0xb3   :  { %v663_v21 = vmax.f32 %v625_v20, 0.0 }
  0xb5   :  { %679 = vst [vmem:[%s1399_s3 + $0x8] sm:$0xff] %v663_v21 }
  0xb6   :  { %v578_v23 = vpop.f32.mrf.mxu2  ;;  %v482_v26 = vpop.f32.mrf.mxu0 }
  0xb7   :  { %v627_v24 = vpop.f32.mrf.mxu3  ;;  %v579_v25 = vadd.f32 %v578_v23, %v530_v22  ;;  %v531_v27 = vpop.f32.mrf.mxu1  ;;  %v483_v29 = vadd.f32 %v1330_v0, %v482_v26 }
  0xb9   :  { %v628_v28 = vadd.f32 %v627_v24, %v579_v25  ;;  %v532_v31 = vadd.f32 %v531_v27, %v483_v29 }
  0xbb   :  { %v664_v30 = vmax.f32 %v628_v28, 0.0 }
  0xbd   :  { %680 = vst [vmem:[%s1399_s3 + $0x10] sm:$0xff] %v664_v30 }
  0xbe   :  { %v580_v32 = vpop.f32.mrf.mxu2  ;;  %v485_v35 = vpop.f32.mrf.mxu0 }
  0xbf   :  { %v629_v33 = vpop.f32.mrf.mxu3  ;;  %v581_v34 = vadd.f32 %v580_v32, %v532_v31  ;;  %v534_v36 = vpop.f32.mrf.mxu1  ;;  %v486_v37 = vadd.f32 %v1330_v0, %v485_v35 }
  0xc1   :  { %v630_v38 = vadd.f32 %v629_v33, %v581_v34  ;;  %v535_v40 = vadd.f32 %v534_v36, %v486_v37 }
  0xc3   :  { %v665_v39 = vmax.f32 %v630_v38, 0.0 }
  0xc5   :  { %681 = vst [vmem:[%s1399_s3 + $0x18] sm:$0xff] %v665_v39 }
  0xc6   :  { %v583_v41 = vpop.f32.mrf.mxu2  ;;  %v487_v44 = vpop.f32.mrf.mxu0 }
  0xc7   :  { %v632_v42 = vpop.f32.mrf.mxu3  ;;  %v584_v43 = vadd.f32 %v583_v41, %v535_v40  ;;  %v536_v45 = vpop.f32.mrf.mxu1  ;;  %v488_v47 = vadd.f32 %v1330_v0, %v487_v44 }
  0xc9   :  { %v633_v46 = vadd.f32 %v632_v42, %v584_v43  ;;  %v537_v49 = vadd.f32 %v536_v45, %v488_v47 }
  0xcb   :  { %v666_v48 = vmax.f32 %v633_v46, 0.0 }
  0xcd   :  { %682 = vst [vmem:[%s1399_s3 + $0x20] sm:$0xff] %v666_v48 }
  0xce   :  { %v585_v50 = vpop.f32.mrf.mxu2  ;;  %v490_v53 = vpop.f32.mrf.mxu0 }
  0xcf   :  { %v634_v51 = vpop.f32.mrf.mxu3  ;;  %v586_v52 = vadd.f32 %v585_v50, %v537_v49  ;;  %v539_v54 = vpop.f32.mrf.mxu1  ;;  %v491_v55 = vadd.f32 %v1330_v0, %v490_v53 }
  0xd1   :  { %v635_v56 = vadd.f32 %v634_v51, %v586_v52  ;;  %v540_v58 = vadd.f32 %v539_v54, %v491_v55 }
  0xd3   :  { %v667_v57 = vmax.f32 %v635_v56, 0.0 }
  0xd5   :  { %683 = vst [vmem:[%s1399_s3 + $0x28] sm:$0xff] %v667_v57 }
  0xd6   :  { %v588_v59 = vpop.f32.mrf.mxu2  ;;  %v492_v62 = vpop.f32.mrf.mxu0 }
  0xd7   :  { %v637_v60 = vpop.f32.mrf.mxu3  ;;  %v589_v61 = vadd.f32 %v588_v59, %v540_v58  ;;  %v541_v63 = vpop.f32.mrf.mxu1  ;;  %v493_v2 = vadd.f32 %v1330_v0, %v492_v62 }
  0xd9   :  { %v638_v1 = vadd.f32 %v637_v60, %v589_v61  ;;  %v542_v4 = vadd.f32 %v541_v63, %v493_v2 }
  0xdb   :  { %v668_v3 = vmax.f32 %v638_v1, 0.0 }
  0xdd   :  { %684 = vst [vmem:[%s1399_s3 + $0x30] sm:$0xff] %v668_v3 }
  0xde   :  { %v590_v5 = vpop.f32.mrf.mxu2  ;;  %v495_v8 = vpop.f32.mrf.mxu0 }
  0xdf   :  { %v639_v6 = vpop.f32.mrf.mxu3  ;;  %v591_v7 = vadd.f32 %v590_v5, %v542_v4  ;;  %v544_v9 = vpop.f32.mrf.mxu1  ;;  %v496_v10 = vadd.f32 %v1330_v0, %v495_v8 }
  0xe1   :  { %v640_v11 = vadd.f32 %v639_v6, %v591_v7  ;;  %v545_v13 = vadd.f32 %v544_v9, %v496_v10 }
  0xe3   :  { %v669_v12 = vmax.f32 %v640_v11, 0.0 }
  0xe5   :  { %685 = vst [vmem:[%s1399_s3 + $0x38] sm:$0xff] %v669_v12 }
  0xe6   :  { %v593_v14 = vpop.f32.mrf.mxu2  ;;  %v497_v17 = vpop.f32.mrf.mxu0 }
  0xe7   :  { %v642_v15 = vpop.f32.mrf.mxu3  ;;  %v594_v16 = vadd.f32 %v593_v14, %v545_v13  ;;  %v546_v18 = vpop.f32.mrf.mxu1  ;;  %v498_v20 = vadd.f32 %v1330_v0, %v497_v17 }
  0xe9   :  { %v643_v19 = vadd.f32 %v642_v15, %v594_v16  ;;  %v547_v22 = vadd.f32 %v546_v18, %v498_v20 }
  0xeb   :  { %v670_v21 = vmax.f32 %v643_v19, 0.0 }
  0xed   :  { %686 = vst [vmem:[%s1399_s3 + $0x40] sm:$0xff] %v670_v21 }
  0xee   :  { %v595_v23 = vpop.f32.mrf.mxu2  ;;  %v500_v26 = vpop.f32.mrf.mxu0 }
  0xef   :  { %v644_v24 = vpop.f32.mrf.mxu3  ;;  %v596_v25 = vadd.f32 %v595_v23, %v547_v22  ;;  %v549_v27 = vpop.f32.mrf.mxu1  ;;  %v501_v28 = vadd.f32 %v1330_v0, %v500_v26 }
  0xf1   :  { %v645_v29 = vadd.f32 %v644_v24, %v596_v25  ;;  %v550_v31 = vadd.f32 %v549_v27, %v501_v28 }
  0xf3   :  { %v671_v30 = vmax.f32 %v645_v29, 0.0 }
  0xf5   :  { %687 = vst [vmem:[%s1399_s3 + $0x48] sm:$0xff] %v671_v30 }
  0xf6   :  { %v598_v32 = vpop.f32.mrf.mxu2  ;;  %v502_v35 = vpop.f32.mrf.mxu0 }
  0xf7   :  { %v647_v33 = vpop.f32.mrf.mxu3  ;;  %v599_v34 = vadd.f32 %v598_v32, %v550_v31  ;;  %v551_v36 = vpop.f32.mrf.mxu1  ;;  %v503_v38 = vadd.f32 %v1330_v0, %v502_v35 }
  0xf9   :  { %v648_v37 = vadd.f32 %v647_v33, %v599_v34  ;;  %v552_v40 = vadd.f32 %v551_v36, %v503_v38 }
  0xfb   :  { %v672_v39 = vmax.f32 %v648_v37, 0.0 }
  0xfd   :  { %688 = vst [vmem:[%s1399_s3 + $0x50] sm:$0xff] %v672_v39 }
  0xfe   :  { %v600_v41 = vpop.f32.mrf.mxu2  ;;  %v505_v44 = vpop.f32.mrf.mxu0 }
  0xff   :  { %v649_v42 = vpop.f32.mrf.mxu3  ;;  %v601_v43 = vadd.f32 %v600_v41, %v552_v40  ;;  %v554_v45 = vpop.f32.mrf.mxu1  ;;  %v506_v46 = vadd.f32 %v1330_v0, %v505_v44 }
 0x101   :  { %v650_v47 = vadd.f32 %v649_v42, %v601_v43  ;;  %v555_v49 = vadd.f32 %v554_v45, %v506_v46 }
 0x103   :  { %v673_v48 = vmax.f32 %v650_v47, 0.0 }
 0x105   :  { %689 = vst [vmem:[%s1399_s3 + $0x58] sm:$0xff] %v673_v48 }
 0x106   :  { %v603_v50 = vpop.f32.mrf.mxu2  ;;  %v507_v53 = vpop.f32.mrf.mxu0 }
 0x107   :  { %v652_v51 = vpop.f32.mrf.mxu3  ;;  %v604_v52 = vadd.f32 %v603_v50, %v555_v49  ;;  %v556_v54 = vpop.f32.mrf.mxu1  ;;  %v508_v56 = vadd.f32 %v1330_v0, %v507_v53 }
 0x109   :  { %v653_v55 = vadd.f32 %v652_v51, %v604_v52  ;;  %v557_v58 = vadd.f32 %v556_v54, %v508_v56 }
 0x10b   :  { %v674_v57 = vmax.f32 %v653_v55, 0.0 }
 0x10d   :  { %690 = vst [vmem:[%s1399_s3 + $0x60] sm:$0xff] %v674_v57 }
 0x10e   :  { %v605_v59 = vpop.f32.mrf.mxu2  ;;  %v510_v62 = vpop.f32.mrf.mxu0 }
 0x10f   :  { %v654_v60 = vpop.f32.mrf.mxu3  ;;  %v606_v61 = vadd.f32 %v605_v59, %v557_v58  ;;  %v511_v63 = vadd.f32 %v1330_v0, %v510_v62  ;;  %v559_v2 = vpop.f32.mrf.mxu1 }
 0x111   :  { %v655_v1 = vadd.f32 %v654_v60, %v606_v61  ;;  %v560_v4 = vadd.f32 %v559_v2, %v511_v63 }
 0x113   :  { %v675_v3 = vmax.f32 %v655_v1, 0.0 }
 0x115   :  { %691 = vst [vmem:[%s1399_s3 + $0x68] sm:$0xff] %v675_v3 }
 0x116   :  { %v608_v5 = vpop.f32.mrf.mxu2  ;;  %v512_v8 = vpop.f32.mrf.mxu0 }
 0x117   :  { %v657_v6 = vpop.f32.mrf.mxu3  ;;  %v609_v7 = vadd.f32 %v608_v5, %v560_v4  ;;  %v513_v10 = vadd.f32 %v1330_v0, %v512_v8  ;;  %v561_v12 = vpop.f32.mrf.mxu1 }
 0x119   :  { %v658_v9 = vadd.f32 %v657_v6, %v609_v7  ;;  %v562_v13 = vadd.f32 %v561_v12, %v513_v10 }
 0x11b   :  { %v676_v11 = vmax.f32 %v658_v9, 0.0 }
 0x11d   :  { %692 = vst [vmem:[%s1399_s3 + $0x70] sm:$0xff] %v676_v11 }
 0x11e   :  { %v610_v14 = vpop.f32.mrf.mxu2 }
 0x11f   :  { %v611_v15 = vadd.f32 %v610_v14, %v562_v13  ;;  %v659_v16 = vpop.f32.mrf.mxu3 }
 0x121   :  { %v660_v17 = vadd.f32 %v659_v16, %v611_v15 }
 0x123   :  { %v677_v18 = vmax.f32 %v660_v17, 0.0 }
 0x125   :  { %693 = vst [vmem:[%s1399_s3 + $0x78] sm:$0xff] %v677_v18 }

</bundles_post_ra>
